<compile_context>
chip_gen: v5e
topology: v5e:2x2
jax: 0.10.0
libtpu: 0.0.40
codegen_flags: <defaults>
</compile_context>

<pallas_src>
import jax
import jax.numpy as jnp
from jax.experimental import pallas as pl
from jax.experimental.pallas import tpu as pltpu


def attention_kernel(qt_ref, k_ref, vt_ref, xt_ref, o_ref):
    # qt_ref: (1, TQ, C8) bf16   k_ref: (1, C8, HW) bf16   vt_ref: (1, HW, C) bf16
    # xt_ref: (1, TQ, C)  f32    o_ref: (1, TQ, C)  f32
    qt = qt_ref[0]                       # (TQ, C8)
    k = k_ref[0]                         # (C8, HW)
    vt = vt_ref[0]                       # (HW, C)

    # scores[i, j] = sum_d Q^T[i, d] * K[d, j]  -> (TQ, HW); bf16 MXU, f32 acc
    s = jnp.dot(qt, k, preferred_element_type=jnp.float32)

    # numerically stable, *unnormalised* softmax over the key axis (lane-dense)
    m = jnp.max(s, axis=-1, keepdims=True)          # XLU reduce
    p = jnp.exp(s - m)                               # EUP
    l = jnp.sum(p, axis=-1, keepdims=True)           # XLU reduce, (TQ, 1)

    # out^T[i, c] = sum_j P[i, j] * V^T[j, c]  -> (TQ, C); bf16 MXU, f32 acc
    out_t = jnp.dot(p.astype(vt.dtype), vt, preferred_element_type=jnp.float32)

    # normalise the small (TQ, C) result instead of the (TQ, HW) probabilities
    inv_l = pl.reciprocal(l, approx=True)            # EUP slot, essentially free
    o_ref[0] = out_t * inv_l + xt_ref[0]              # residual add, f32


def _pick_tq(hw, cap):
    """Largest query tile that is a multiple of 128, divides HW and is <= cap."""
    if hw % 128 != 0:
        return hw                      # small / odd spatial extent: one tile
    best = 128
    t = 128
    limit = min(hw, cap)
    while t <= limit:
        if hw % t == 0:
            best = t
        t += 128
    return best


def attention_pallas(x, wq, bq, wk, bk, wv, bv):
    """x: (N, C, H, W) f32
    wq/wk: (C//8, C), bq/bk: (C//8,), wv: (C, C), bv: (C,)
    returns (N, C, H, W) f32 — matches AttentionLayer.forward."""
    N, C, H, W = x.shape
    C8 = wq.shape[0]
    HW = H * W

    xf = x.reshape(N, C, HW).astype(jnp.float32)
    xt = jnp.transpose(xf, (0, 2, 1))                                 # (N, HW, C) f32 residual

    # 1x1 convs hoisted to XLA: one big matmul per projection.
    # q^T and v^T are produced directly in (N, HW, *) layout so the kernel
    # never transposes; all three are bf16 MXU operands.
    qt = (jnp.einsum('ncp,oc->npo', xf, wq) + bq[None, None, :]).astype(jnp.bfloat16)  # (N, HW, C8)
    k = (jnp.einsum('oc,ncp->nop', wk, xf) + bk[None, :, None]).astype(jnp.bfloat16)   # (N, C8, HW)
    vt = (jnp.einsum('ncp,oc->npo', xf, wv) + bv[None, None, :]).astype(jnp.bfloat16)  # (N, HW, C)

    # --- chip-aware tiling / VMEM budget -------------------------------------
    try:
        vmem_cap = int(pltpu.get_tpu_info().vmem_capacity_bytes)
    except Exception:
        vmem_cap = 64 << 20            # conservative (v7x) default
    tq_cap = 1024 if vmem_cap >= (96 << 20) else 256
    TQ = _pick_tq(HW, tq_cap)
    grid = (N, HW // TQ)

    kv_bytes = (C8 * HW + HW * C) * 2                   # one bf16 copy of K + V^T
    # Single-buffer K/V^T only when they are big and VMEM is tight (v7x 64 MiB);
    # their block index is constant across the query-tile axis anyway.
    single_buffer_kv = (vmem_cap < (96 << 20)) and (kv_bytes > (8 << 20))

    kv_vmem = (1 if single_buffer_kv else 2) * kv_bytes
    tile_vmem = 2 * (TQ * C8 * 2 + 2 * TQ * C * 4)       # qt (bf16) + x/out (f32), 2-buffered
    temp_vmem = 2 * TQ * HW * 4                          # score / prob f32 temporaries
    vmem_limit = max(int(1.5 * (kv_vmem + tile_vmem + temp_vmem)), 32 << 20)
    vmem_limit = min(vmem_limit, int(0.9 * vmem_cap))

    if single_buffer_kv:
        k_spec = pl.BlockSpec((1, C8, HW), lambda b, qi: (b, 0, 0),
                              pipeline_mode=pl.Buffered(1))
        vt_spec = pl.BlockSpec((1, HW, C), lambda b, qi: (b, 0, 0),
                               pipeline_mode=pl.Buffered(1))
    else:
        k_spec = pl.BlockSpec((1, C8, HW), lambda b, qi: (b, 0, 0))
        vt_spec = pl.BlockSpec((1, HW, C), lambda b, qi: (b, 0, 0))

    # Megacore: split on batch when N >= 2 so each core streams distinct K/V.
    dim_sem = ("parallel", "arbitrary") if N >= 2 else ("arbitrary", "parallel")

    cost = pl.CostEstimate(
        flops=2 * N * HW * HW * (C8 + C),
        transcendentals=N * HW * HW,
        bytes_accessed=(qt.size + k.size + vt.size) * 2 + xt.size * 4 + N * HW * C * 4,
    )

    out_t = pl.pallas_call(
        attention_kernel,
        out_shape=jax.ShapeDtypeStruct((N, HW, C), jnp.float32),
        grid_spec=pltpu.PrefetchScalarGridSpec(
            num_scalar_prefetch=0,
            grid=grid,
            in_specs=[
                pl.BlockSpec((1, TQ, C8), lambda b, qi: (b, qi, 0)),   # Q^T tile
                k_spec,                                                # K (full, per batch)
                vt_spec,                                               # V^T (full, per batch)
                pl.BlockSpec((1, TQ, C), lambda b, qi: (b, qi, 0)),    # x residual tile
            ],
            out_specs=pl.BlockSpec((1, TQ, C), lambda b, qi: (b, qi, 0)),
        ),
        compiler_params=pltpu.CompilerParams(
            dimension_semantics=dim_sem,
            vmem_limit_bytes=vmem_limit),
        cost_estimate=cost,
    )(qt, k, vt, xt)

    # back to the module's NCHW layout
    return jnp.transpose(out_t, (0, 2, 1)).reshape(N, C, H, W)


def attention_reference(x, wq, bq, wk, bk, wv, bv):
    """Pure-JAX f32 reference matching the PyTorch forward."""
    N, C, H, W = x.shape
    HW = H * W
    xf = x.reshape(N, C, HW)
    q = jnp.einsum('oc,ncp->nop', wq, xf) + bq[None, :, None]   # (N, C8, HW)
    k = jnp.einsum('oc,ncp->nop', wk, xf) + bk[None, :, None]   # (N, C8, HW)
    v = jnp.einsum('oc,ncp->nop', wv, xf) + bv[None, :, None]   # (N, C, HW)
    scores = jnp.einsum('ndp,ndq->npq', q, k)                   # bmm(Q^T, K)
    attn = jax.nn.softmax(scores, axis=-1)
    out = jnp.einsum('ncq,npq->ncp', v, attn)                   # bmm(V, A^T)
    return (out + xf).reshape(N, C, H, W)


if __name__ == "__main__":
    # Channels must be >= 8 so that Conv2d(channels, channels // 8) is well-formed.
    N, C, H, W = 2, 16, 16, 16
    C8 = C // 8

    key = jax.random.PRNGKey(0)
    kx, k1, k2, k3, k4, k5, k6 = jax.random.split(key, 7)

    x = jax.random.normal(kx, (N, C, H, W), dtype=jnp.float32)

    # Deterministic nn.Conv2d-style init: U(-bound, bound), bound = 1/sqrt(fan_in)
    bound = 1.0 / jnp.sqrt(jnp.float32(C))
    wq = jax.random.uniform(k1, (C8, C), jnp.float32, -bound, bound)
    bq = jax.random.uniform(k2, (C8,), jnp.float32, -bound, bound)
    wk = jax.random.uniform(k3, (C8, C), jnp.float32, -bound, bound)
    bk = jax.random.uniform(k4, (C8,), jnp.float32, -bound, bound)
    wv = jax.random.uniform(k5, (C, C), jnp.float32, -bound, bound)
    bv = jax.random.uniform(k6, (C,), jnp.float32, -bound, bound)

    out = attention_pallas(x, wq, bq, wk, bk, wv, bv)
    jax.block_until_ready(out)

    ref = attention_reference(x, wq, bq, wk, bk, wv, bv)
    assert out.shape == (N, C, H, W)
    # bf16 MXU operands + approx reciprocal -> loosened tolerance vs f32 reference.
    max_err = float(jnp.max(jnp.abs(out - ref)))
    assert max_err < 3e-2, max_err

    print("KERNEL_OK")
</pallas_src>

<mosaic_0001>
module attributes {stable_mosaic.version = 11 : i64} {
  func.func @attention_kernel(%arg0: i32, %arg1: i32, %arg2: memref<1x256x2xbf16, #tpu.memory_space<vmem>>, %arg3: memref<1x2x256xbf16, #tpu.memory_space<vmem>>, %arg4: memref<1x256x16xbf16, #tpu.memory_space<vmem>>, %arg5: memref<1x256x16xf32, #tpu.memory_space<vmem>>, %arg6: memref<1x256x16xf32, #tpu.memory_space<vmem>>) attributes {dimension_semantics = [#tpu.dimension_semantics<parallel>, #tpu.dimension_semantics<arbitrary>], iteration_bounds = array<i64: 2, 1>, scalar_prefetch = 0 : i64, scratch_operands = 0 : i64, tpu.core_type = #tpu.core_type<tc>, window_params = [{transform_indices = @transform_0, window_bounds = array<i64: 1, 256, 2>}, {transform_indices = @transform_1, window_bounds = array<i64: 1, 2, 256>}, {transform_indices = @transform_2, window_bounds = array<i64: 1, 256, 16>}, {transform_indices = @transform_3, window_bounds = array<i64: 1, 256, 16>}, {transform_indices = @transform_4, window_bounds = array<i64: 1, 256, 16>}]} {
    %c0 = arith.constant 0 : index
    %c0_0 = arith.constant 0 : index
    %c0_1 = arith.constant 0 : index
    %0 = vector.load %arg2[%c0, %c0_0, %c0_1] : memref<1x256x2xbf16, #tpu.memory_space<vmem>>, vector<1x256x2xbf16>
    %1 = vector.shape_cast %0 : vector<1x256x2xbf16> to vector<256x2xbf16>
    %c0_2 = arith.constant 0 : index
    %c0_3 = arith.constant 0 : index
    %c0_4 = arith.constant 0 : index
    %2 = vector.load %arg3[%c0_2, %c0_3, %c0_4] : memref<1x2x256xbf16, #tpu.memory_space<vmem>>, vector<1x2x256xbf16>
    %3 = vector.shape_cast %2 : vector<1x2x256xbf16> to vector<2x256xbf16>
    %c0_5 = arith.constant 0 : index
    %c0_6 = arith.constant 0 : index
    %c0_7 = arith.constant 0 : index
    %4 = vector.load %arg4[%c0_5, %c0_6, %c0_7] : memref<1x256x16xbf16, #tpu.memory_space<vmem>>, vector<1x256x16xbf16>
    %5 = vector.shape_cast %4 : vector<1x256x16xbf16> to vector<256x16xbf16>
    %cst = arith.constant dense<0.000000e+00> : vector<256x256xf32>
    %6 = tpu.matmul %1, %3, %cst {dimension_numbers = #tpu.dot_dimension_numbers<[1], [0], [0], [1], [0, 0, 1, 1], [], []>} : vector<256x2xbf16>, vector<2x256xbf16>, vector<256x256xf32> -> vector<256x256xf32>
    %cst_8 = arith.constant dense<0xFF800000> : vector<256xf32>
    %7 = vector.multi_reduction <maximumf>, %6, %cst_8 [1] : vector<256x256xf32> to vector<256xf32>
    %8 = vector.shape_cast %7 : vector<256xf32> to vector<256x1xf32>
    %9 = vector.broadcast %8 : vector<256x1xf32> to vector<256x256xf32>
    %10 = arith.subf %6, %9 : vector<256x256xf32>
    %11 = math.exp %10 : vector<256x256xf32>
    %cst_9 = arith.constant dense<0.000000e+00> : vector<256xf32>
    %12 = vector.multi_reduction <add>, %11, %cst_9 [1] : vector<256x256xf32> to vector<256xf32>
    %13 = vector.shape_cast %12 : vector<256xf32> to vector<256x1xf32>
    %14 = arith.truncf %11 : vector<256x256xf32> to vector<256x256xbf16>
    %cst_10 = arith.constant dense<0.000000e+00> : vector<256x16xf32>
    %15 = tpu.matmul %14, %5, %cst_10 {dimension_numbers = #tpu.dot_dimension_numbers<[1], [0], [0], [1], [0, 0, 1, 1], [], []>} : vector<256x256xbf16>, vector<256x16xbf16>, vector<256x16xf32> -> vector<256x16xf32>
    %16 = tpu.reciprocal %13 {approx = true} : vector<256x1xf32> -> vector<256x1xf32>
    %17 = vector.broadcast %16 : vector<256x1xf32> to vector<256x16xf32>
    %18 = arith.mulf %15, %17 : vector<256x16xf32>
    %c0_11 = arith.constant 0 : index
    %c0_12 = arith.constant 0 : index
    %c0_13 = arith.constant 0 : index
    %19 = vector.load %arg5[%c0_11, %c0_12, %c0_13] : memref<1x256x16xf32, #tpu.memory_space<vmem>>, vector<1x256x16xf32>
    %20 = vector.shape_cast %19 : vector<1x256x16xf32> to vector<256x16xf32>
    %21 = arith.addf %18, %20 : vector<256x16xf32>
    %c0_14 = arith.constant 0 : index
    %c0_15 = arith.constant 0 : index
    %c0_16 = arith.constant 0 : index
    %22 = vector.load %arg6[%c0_14, %c0_15, %c0_16] : memref<1x256x16xf32, #tpu.memory_space<vmem>>, vector<1x256x16xf32>
    %23 = vector.shape_cast %22 : vector<1x256x16xf32> to vector<256x16xf32>
    %24 = vector.shape_cast %21 : vector<256x16xf32> to vector<1x256x16xf32>
    tpu.vector_store %arg6[%c0_14, %c0_15, %c0_16], %24 {strides = array<i32>} : memref<1x256x16xf32, #tpu.memory_space<vmem>>, vector<1x256x16xf32>,
    return
  }
  func.func @transform_0(%arg0: i32, %arg1: i32) -> (i32, i32, i32) {
    %c0_i32 = arith.constant 0 : i32
    %c0_i32_0 = arith.constant 0 : i32
    return %arg0, %arg1, %c0_i32 : i32, i32, i32
  }
  func.func @transform_1(%arg0: i32, %arg1: i32) -> (i32, i32, i32) {
    %c0_i32 = arith.constant 0 : i32
    %c0_i32_0 = arith.constant 0 : i32
    %c0_i32_1 = arith.constant 0 : i32
    return %arg0, %c0_i32, %c0_i32_0 : i32, i32, i32
  }
  func.func @transform_2(%arg0: i32, %arg1: i32) -> (i32, i32, i32) {
    %c0_i32 = arith.constant 0 : i32
    %c0_i32_0 = arith.constant 0 : i32
    %c0_i32_1 = arith.constant 0 : i32
    return %arg0, %c0_i32, %c0_i32_0 : i32, i32, i32
  }
  func.func @transform_3(%arg0: i32, %arg1: i32) -> (i32, i32, i32) {
    %c0_i32 = arith.constant 0 : i32
    %c0_i32_0 = arith.constant 0 : i32
    return %arg0, %arg1, %c0_i32 : i32, i32, i32
  }
  func.func @transform_4(%arg0: i32, %arg1: i32) -> (i32, i32, i32) {
    %c0_i32 = arith.constant 0 : i32
    %c0_i32_0 = arith.constant 0 : i32
    return %arg0, %arg1, %c0_i32 : i32, i32, i32
  }
}

</mosaic_0001>

<bundles_post_ra>
// kernel: tpu_custom_call.1
= control target key start
LH: loop header
LB: loop body
LE: loop exit
PB: predicated region body
PF: predicated region fallthrough
CT: control target
= control target key end

     0   :  { %s2149_s15 = smov 0   ;;  %s2151_s16 = smov 0   ;;  %s2777_s0 = inlined_call_operand.vmem [shape: bf16[2,256,2], index: 0, kind: input, shape index: {}]   ;;  %s2778_s1 = inlined_call_operand.vmem [shape: bf16[2,2,256], index: 1, kind: input, shape index: {}]   ;;  %s2779_s2 = inlined_call_operand.vmem [shape: bf16[2,256,16], index: 2, kind: input, shape index: {}]   ;;  %s2780_s3 = inlined_call_operand.vmem [shape: f32[2,256,16], index: 3, kind: input, shape index: {}]   ;;  %s2781_s4 = inlined_call_operand.vmem [shape: f32[2,256,16], index: 4, kind: output, shape index: {}]  }
   0x1   :  { %s2153_s17 = smov 0  }
   0x2 LB: > { %s26_s18 = sadd.s32 1, %s2118_s16  ;;  %p1676_p0 = scmp.ge.s32.totalorder %s2122_s17, 1  ;;  %s2122_s17 = sphi %s2153_s17, %s14_s17   ;;  %s2118_s16 = sphi %s2151_s16, %s2783_s16   ;;  %s2114_s15 = sphi %s2149_s15, %s2782_s15  }
   0x3   : > { %p28_p1 = scmp.ge.s32.totalorder %s26_s18, 2  ;;  %p219_p2 = scmp.lt.s32.totalorder %s2122_s17, 3 }
   0x5   : > { %s2785_s18 = smov (%p28_p1, %s26_s18), 0  ;;  %p220_p3 = pnand %p1676_p0, %p219_p2 }
   0x6   : > { %p272_p4 = scmp.lt.s32.totalorder (!%p220_p3), %s2114_s15, 1 }
   0x7   : > { %223 = sbr.rel (%p220_p3) target bundleno = 682 (0x2aa), region = 36 }
   0xc   : > { %s2787_s15 = smov (!%p272_p4, %s2114_s15), 1  ;;  %vm509_vm0 = vcmask 1040384   ;;  %vm460_vm1 = vcmask 15360   ;;  %vm1510_vm2 = vcmask 130048  }
   0xd   : > { %s1679_s19 = sshll.u32 %s2787_s15, 1  ;;  %s1848_s23 = sshll.u32 %s2787_s15, 7 }
   0xe   : > { %s284_s22 = scalar_lea.vmem %s2778_s1, %s1679_s19  ;;  %s2179_s26 = scalar_lea.vmem %s2777_s0, %s1848_s23 }
   0xf   : > { %v343_v0 = vld [vmem:[%s284_s22] sm:$0x3]  ;;  %v1853_v6 = vld [vmem:[%s2179_s26 + $0x8] sm:$0xff]  ;;  %v1854_v7 = vld [vmem:[%s2179_s26 + $0x10] sm:$0xff]  ;;  %s2279_s29 = scalar_lea.vmem %s2779_s2, %s1848_s23  ;;  %s1850_s30 = sshll.u32 %s2787_s15, 8 }
  0x10   : > { %457 = vst [vmem:[#allocation1] ss:$9 sm:$0xff] %v343_v0  ;;  %v1852_v5 = vld [vmem:[%s2179_s26] sm:$0xff]  ;;  %v1855_v8 = vld [vmem:[%s2179_s26 + $0x18] sm:$0xff]  ;;  %v1857_v10 = vld [vmem:[%s2179_s26 + $0x28] sm:$0xff]  ;;  %s2627_s7 = scalar_lea.vmem %s2780_s3, %s1850_s30  ;;  %s2634_s10 = scalar_lea.vmem %s2781_s4, %s1850_s30 }
  0x11   : > { %v1856_v9 = vld [vmem:[%s2179_s26 + $0x20] sm:$0xff]  ;;  %v1858_v11 = vld [vmem:[%s2179_s26 + $0x30] sm:$0xff]  ;;  %v1859_v12 = vld [vmem:[%s2179_s26 + $0x38] sm:$0xff] }
  0x12   : > { %v1860_v13 = vld [vmem:[%s2179_s26 + $0x40] sm:$0xff]  ;;  %v1861_v20 = vld [vmem:[%s2179_s26 + $0x48] sm:$0xff]  ;;  %v1862_v27 = vld [vmem:[%s2179_s26 + $0x50] sm:$0xff] }
  0x13   : > { %v1863_v34 = vld [vmem:[%s2179_s26 + $0x58] sm:$0xff]  ;;  %v1864_v41 = vld [vmem:[%s2179_s26 + $0x60] sm:$0xff]  ;;  %v1865_v50 = vld [vmem:[%s2179_s26 + $0x68] sm:$0xff] }
  0x14   : > { %v1875_v48 = vld [vmem:[%s2279_s29 + $0x38] sm:$0xff]  ;;  %v1874_v53 = vld [vmem:[%s2279_s29 + $0x30] sm:$0xff]  ;;  %v1873_v56 = vld [vmem:[%s2279_s29 + $0x28] sm:$0xff] }
  0x15   : > { %v1883_v49 = vld [vmem:[%s2279_s29 + $0x78] sm:$0xff]  ;;  %1204 = vmatpush.bf16.msra.mxu2 %v1875_v48  ;;  %v1882_v54 = vld [vmem:[%s2279_s29 + $0x70] sm:$0xff]  ;;  %v1881_v57 = vld [vmem:[%s2279_s29 + $0x68] sm:$0xff] }
  0x16   : > { %1293 = vmatpush.bf16.msra.mxu3 %v1883_v49  ;;  %v1872_v61 = vld [vmem:[%s2279_s29 + $0x20] sm:$0xff]  ;;  %v1871_v63 = vld [vmem:[%s2279_s29 + $0x18] sm:$0xff] }
  0x17   : > { %v458_v1 = vld [vmem:[#allocation1] sm:$0xff]  ;;  %v459_v2 = vld [vmem:[#allocation1 + $0x9] sm:$0xff]  ;;  %v1879_v0 = vld [vmem:[%s2279_s29 + $0x58] sm:$0xff] }
  0x18   : > { %v510_v3 = vsel %vm509_vm0, %v458_v1, 0  ;;  %v512_v4 = vsel %vm509_vm0, %v459_v2, 0  ;;  %v1880_v62 = vld [vmem:[%s2279_s29 + $0x60] sm:$0xff]  ;;  %v1866_v1 = vld [vmem:[%s2179_s26 + $0x70] sm:$0xff] }
  0x19   : > { %521 = vmatpush.bf16.msra.mxu0 %v510_v3  ;;  %610 = vmatpush.bf16.msra.mxu1 %v512_v4 }
  0x1a   : > { %1205 = vmatpush.bf16.msra.mxu2 %v1874_v53  ;;  %1294 = vmatpush.bf16.msra.mxu3 %v1882_v54 }
  0x1c   : > { %1750 = vmatmul.msk.bf16.vlgmr.msra.gmra.mxu0 %vm460_vm1, %v1852_v5  ;;  %1766 = vmatmul.msk.bf16.vlgmr.msra.gmra.mxu1 %vm460_vm1, %v1852_v5  ;;  %v1870_v5 = vld [vmem:[%s2279_s29 + $0x10] sm:$0xff] }
  0x1e   : > { %1206 = vmatpush.bf16.msra.mxu2 %v1873_v56  ;;  %1295 = vmatpush.bf16.msra.mxu3 %v1881_v57 }
  0x22   : > { %1207 = vmatpush.bf16.msra.mxu2 %v1872_v61  ;;  %1296 = vmatpush.bf16.msra.mxu3 %v1880_v62 }
  0x26   : > { %1208 = vmatpush.bf16.msra.mxu2 %v1871_v63  ;;  %1297 = vmatpush.bf16.msra.mxu3 %v1879_v0 }
  0x2a   : > { %1209 = vmatpush.bf16.msra.mxu2 %v1870_v5 }
  0x2c   : > { %1751 = vmatmul.msk.bf16.gmra.mxu0 %vm460_vm1, %v1853_v6  ;;  %1767 = vmatmul.msk.bf16.gmra.mxu1 %vm460_vm1, %v1853_v6  ;;  %v1878_v6 = vld [vmem:[%s2279_s29 + $0x50] sm:$0xff] }
  0x2d   : > { %1298 = vmatpush.bf16.msra.mxu3 %v1878_v6 }
  0x3c   : > { %1752 = vmatmul.msk.bf16.gmra.mxu0 %vm460_vm1, %v1854_v7  ;;  %1768 = vmatmul.msk.bf16.gmra.mxu1 %vm460_vm1, %v1854_v7  ;;  %v1869_v7 = vld [vmem:[%s2279_s29 + $0x8] sm:$0xff] }
  0x3d   : > { %1210 = vmatpush.bf16.msra.mxu2 %v1869_v7 }
  0x4c   : > { %1753 = vmatmul.msk.bf16.gmra.mxu0 %vm460_vm1, %v1855_v8  ;;  %1769 = vmatmul.msk.bf16.gmra.mxu1 %vm460_vm1, %v1855_v8  ;;  %v1877_v8 = vld [vmem:[%s2279_s29 + $0x48] sm:$0xff] }
  0x4d   : > { %1299 = vmatpush.bf16.msra.mxu3 %v1877_v8 }
  0x5c   : > { %1754 = vmatmul.msk.bf16.gmra.mxu0 %vm460_vm1, %v1856_v9  ;;  %1770 = vmatmul.msk.bf16.gmra.mxu1 %vm460_vm1, %v1856_v9 }
  0x6c   : > { %1755 = vmatmul.msk.bf16.gmra.mxu0 %vm460_vm1, %v1857_v10  ;;  %1771 = vmatmul.msk.bf16.gmra.mxu1 %vm460_vm1, %v1857_v10 }
  0x7c   : > { %1756 = vmatmul.msk.bf16.gmra.mxu0 %vm460_vm1, %v1858_v11  ;;  %1772 = vmatmul.msk.bf16.gmra.mxu1 %vm460_vm1, %v1858_v11 }
  0x8c   : > { %1757 = vmatmul.msk.bf16.gmra.mxu0 %vm460_vm1, %v1859_v12  ;;  %1773 = vmatmul.msk.bf16.gmra.mxu1 %vm460_vm1, %v1859_v12  ;;  %v1868_v12 = vld [vmem:[%s2279_s29] sm:$0xff] }
  0x8d   : > { %1211 = vmatpush.bf16.msra.mxu2 %v1868_v12 }
  0x99   : > { %v2206_v14 = vpop.f32.mrf.mxu0  ;;  %v2208_v15 = vpop.f32.mrf.mxu1 }
  0x9a   : > { %v692_v16 = vmax.f32 %v2206_v14, %v2208_v15 }
  0x9c   : > { %1758 = vmatmul.msk.bf16.gmra.mxu0 %vm460_vm1, %v1860_v13  ;;  %1774 = vmatmul.msk.bf16.gmra.mxu1 %vm460_vm1, %v1860_v13  ;;  %v1876_v13 = vld [vmem:[%s2279_s29 + $0x40] sm:$0xff] }
  0x9d   : > { %693 = vmax.xlane.f32.xlu0 %v692_v16  ;;  %1300 = vmatpush.bf16.msra.mxu3 %v1876_v13  ;;  %v1867_v16 = vld [vmem:[%s2179_s26 + $0x78] sm:$0xff] }
  0xa1   : > { %v2214_v17 = vpop.f32.mrf.mxu0  ;;  %v2216_v18 = vpop.f32.mrf.mxu1 }
  0xa2   : > { %v695_v19 = vmax.f32 %v2214_v17, %v2216_v18 }
  0xa5   : > { %696 = vmax.xlane.f32.xlu0 %v695_v19 }
  0xa9   : > { %v2221_v21 = vpop.f32.mrf.mxu0  ;;  %v2223_v22 = vpop.f32.mrf.mxu1 }
  0xaa   : > { %v698_v23 = vmax.f32 %v2221_v21, %v2223_v22 }
  0xac   : > { %1759 = vmatmul.msk.bf16.gmra.mxu0 %vm460_vm1, %v1861_v20  ;;  %1775 = vmatmul.msk.bf16.gmra.mxu1 %vm460_vm1, %v1861_v20 }
  0xad   : > { %699 = vmax.xlane.f32.xlu1 %v698_v23 }
  0xb1   : > { %v2229_v24 = vpop.f32.mrf.mxu0  ;;  %v2231_v25 = vpop.f32.mrf.mxu1 }
  0xb2   : > { %v701_v26 = vmax.f32 %v2229_v24, %v2231_v25 }
  0xb5   : > { %702 = vmax.xlane.f32.xlu1 %v701_v26 }
  0xb9   : > { %v2236_v28 = vpop.f32.mrf.mxu0  ;;  %v2238_v29 = vpop.f32.mrf.mxu1 }
  0xba   : > { %v704_v30 = vmax.f32 %v2236_v28, %v2238_v29 }
  0xbc   : > { %1760 = vmatmul.msk.bf16.gmra.mxu0 %vm460_vm1, %v1862_v27  ;;  %1776 = vmatmul.msk.bf16.gmra.mxu1 %vm460_vm1, %v1862_v27 }
  0xbd   : > { %705 = vmax.xlane.f32.xlu2 %v704_v30 }
  0xc1   : > { %v2244_v31 = vpop.f32.mrf.mxu0  ;;  %v2246_v32 = vpop.f32.mrf.mxu1 }
  0xc2   : > { %v707_v33 = vmax.f32 %v2244_v31, %v2246_v32 }
  0xc5   : > { %708 = vmax.xlane.f32.xlu2 %v707_v33 }
  0xc9   : > { %v2251_v35 = vpop.f32.mrf.mxu0  ;;  %v2253_v36 = vpop.f32.mrf.mxu1 }
  0xca   : > { %v710_v37 = vmax.f32 %v2251_v35, %v2253_v36 }
  0xcc   : > { %1761 = vmatmul.msk.bf16.gmra.mxu0 %vm460_vm1, %v1863_v34  ;;  %1777 = vmatmul.msk.bf16.gmra.mxu1 %vm460_vm1, %v1863_v34 }
  0xcd   : > { %711 = vmax.xlane.f32.xlu0 %v710_v37 }
  0xd1   : > { %v2259_v38 = vpop.f32.mrf.mxu0  ;;  %v2261_v39 = vpop.f32.mrf.mxu1 }
  0xd2   : > { %v713_v40 = vmax.f32 %v2259_v38, %v2261_v39 }
  0xd4   : > { %714 = vmax.xlane.f32.xlu1 %v713_v40 }
  0xd9   : > { %v2266_v42 = vpop.f32.mrf.mxu0  ;;  %v2268_v43 = vpop.f32.mrf.mxu1 }
  0xda   : > { %v716_v44 = vmax.f32 %v2266_v42, %v2268_v43 }
  0xdc   : > { %1762 = vmatmul.msk.bf16.gmra.mxu0 %vm460_vm1, %v1864_v41  ;;  %1778 = vmatmul.msk.bf16.gmra.mxu1 %vm460_vm1, %v1864_v41 }
  0xdd   : > { %717 = vmax.xlane.f32.xlu2 %v716_v44 }
  0xe1   : > { %v2281_v45 = vpop.f32.mrf.mxu0  ;;  %v2283_v46 = vpop.f32.mrf.mxu1 }
  0xe2   : > { %v719_v47 = vmax.f32 %v2281_v45, %v2283_v46 }
  0xe4   : > { %720 = vmax.xlane.f32.xlu0 %v719_v47 }
  0xe9   : > { %v2290_v51 = vpop.f32.mrf.mxu0  ;;  %v2292_v52 = vpop.f32.mrf.mxu1 }
  0xea   : > { %v722_v55 = vmax.f32 %v2290_v51, %v2292_v52 }
  0xec   : > { %1763 = vmatmul.msk.bf16.gmra.mxu0 %vm460_vm1, %v1865_v50  ;;  %1779 = vmatmul.msk.bf16.gmra.mxu1 %vm460_vm1, %v1865_v50 }
  0xed   : > { %723 = vmax.xlane.f32.xlu1 %v722_v55 }
  0xf1   : > { %v2302_v58 = vpop.f32.mrf.mxu0  ;;  %v2304_v59 = vpop.f32.mrf.mxu1 }
  0xf2   : > { %v725_v60 = vmax.f32 %v2302_v58, %v2304_v59 }
  0xf4   : > { %726 = vmax.xlane.f32.xlu2 %v725_v60 }
  0xf9   : > { %v2313_v2 = vpop.f32.mrf.mxu0  ;;  %v2315_v3 = vpop.f32.mrf.mxu1 }
  0xfa   : > { %v728_v4 = vmax.f32 %v2313_v2, %v2315_v3 }
  0xfc   : > { %1764 = vmatmul.msk.bf16.gmra.mxu0 %vm460_vm1, %v1866_v1  ;;  %1780 = vmatmul.msk.bf16.gmra.mxu1 %vm460_vm1, %v1866_v1 }
  0xfd   : > { %729 = vmax.xlane.f32.xlu0 %v728_v4 }
 0x101   : > { %v2325_v9 = vpop.f32.mrf.mxu0  ;;  %v2327_v10 = vpop.f32.mrf.mxu1 }
 0x102   : > { %v731_v11 = vmax.f32 %v2325_v9, %v2327_v10 }
 0x104   : > { %732 = vmax.xlane.f32.xlu1 %v731_v11 }
 0x109   : > { %v2334_v19 = vpop.f32.mrf.mxu0  ;;  %v2336_v20 = vpop.f32.mrf.mxu1 }
 0x10a   : > { %v734_v23 = vmax.f32 %v2334_v19, %v2336_v20 }
 0x10c   : > { %1765 = vmatmul.msk.bf16.gmra.mxu0 %vm460_vm1, %v1867_v16  ;;  %1781 = vmatmul.msk.bf16.gmra.mxu1 %vm460_vm1, %v1867_v16 }
 0x10d   : > { %735 = vmax.xlane.f32.xlu2 %v734_v23 }
 0x110   : > { %v694_v26 = vpop.xlane.xlu0 %693 }
 0x111   : > { %v788_v27 = vsub.f32 %v2206_v14, %v694_v26  ;;  %v789_v30 = vsub.f32 %v2208_v15, %v694_v26  ;;  %v2344_v33 = vpop.f32.mrf.mxu0  ;;  %v2346_v34 = vpop.f32.mrf.mxu1 }
 0x112   : > { %v737_v37 = vmax.f32 %v2344_v33, %v2346_v34 }
 0x113   : > { %v852_v40 = vmul.f32 1.442695, %v788_v27  ;;  %v854_v41 = vmul.f32 1.442695, %v789_v30 }
 0x114   : > { %738 = vmax.xlane.f32.xlu0 %v737_v37 }
 0x115   : > { %1908 = vpow2.f32 %v852_v40 }
 0x116   : > { %1910 = vpow2.f32 %v854_v41 }
 0x118   : > { %v697_v44 = vpop.xlane.xlu0 %696 }
 0x119   : > { %v790_v47 = vsub.f32 %v2214_v17, %v697_v44  ;;  %v791_v48 = vsub.f32 %v2216_v18, %v697_v44  ;;  %v2352_v14 = vpop.f32.mrf.mxu0  ;;  %v2354_v15 = vpop.f32.mrf.mxu1 }
 0x11a   : > { %v740_v49 = vmax.f32 %v2352_v14, %v2354_v15 }
 0x11b   : > { %v1909_v50 = vpop.eup %1908  ;;  %v856_v53 = vmul.f32 1.442695, %v790_v47  ;;  %v858_v54 = vmul.f32 1.442695, %v791_v48 }
 0x11c   : > { %v1911_v55 = vpop.eup %1910  ;;  %741 = vmax.xlane.f32.xlu1 %v740_v49 }
 0x11d   : > { %1912 = vpow2.f32 %v856_v53  ;;  %v2358_v56 = vadd.f32 %v1911_v55, %v1909_v50 }
 0x11e   : > { %1914 = vpow2.f32 %v858_v54 }
 0x120   : > { %v700_v57 = vpop.xlane.xlu1 %699 }
 0x121   : > { %v792_v17 = vsub.f32 %v2221_v21, %v700_v57  ;;  %v793_v18 = vsub.f32 %v2223_v22, %v700_v57  ;;  %v2362_v60 = vpop.f32.mrf.mxu0  ;;  %v2364_v61 = vpop.f32.mrf.mxu1 }
 0x122   : > { %v743_v62 = vmax.f32 %v2362_v60, %v2364_v61 }
 0x123   : > { %v1913_v63 = vpop.eup %1912  ;;  %v860_v0 = vmul.f32 1.442695, %v792_v17  ;;  %v862_v1 = vmul.f32 1.442695, %v793_v18 }
 0x124   : > { %v1915_v4 = vpop.eup %1914  ;;  %744 = vmax.xlane.f32.xlu2 %v743_v62  ;;  %v1076_v5 = vpack.c.bf16 %v1913_v63, %v1909_v50 }
 0x125   : > { %1916 = vpow2.f32 %v860_v0  ;;  %v1077_v6 = vpack.c.bf16 %v1915_v4, %v1911_v55  ;;  %v2368_v7 = vadd.f32 %v1915_v4, %v1913_v63 }
 0x126   : > { %1918 = vpow2.f32 %v862_v1  ;;  %1212 = vmatmul.bf16.vlgmr.msra.gmra.mxu2 %v1076_v5 }
 0x127   : > { %1301 = vmatmul.bf16.vlgmr.msra.gmra.mxu3 %v1077_v6 }
 0x128   : > { %v703_v21 = vpop.xlane.xlu1 %702 }
 0x129   : > { %v794_v22 = vsub.f32 %v2229_v24, %v703_v21  ;;  %v795_v8 = vsub.f32 %v2231_v25, %v703_v21  ;;  %v2372_v11 = vpop.f32.mrf.mxu0  ;;  %v2374_v12 = vpop.f32.mrf.mxu1 }
 0x12a   : > { %v746_v13 = vmax.f32 %v2372_v11, %v2374_v12 }
 0x12b   : > { %v1917_v16 = vpop.eup %1916  ;;  %v864_v23 = vmul.f32 1.442695, %v794_v22  ;;  %v866_v26 = vmul.f32 1.442695, %v795_v8 }
 0x12c   : > { %v1919_v27 = vpop.eup %1918  ;;  %747 = vmax.xlane.f32.xlu0 %v746_v13 }
 0x12d   : > { %1920 = vpow2.f32 %v864_v23  ;;  %v2378_v30 = vadd.f32 %v1919_v27, %v1917_v16 }
 0x12e   : > { %1922 = vpow2.f32 %v866_v26 }
 0x130   : > { %v706_v37 = vpop.xlane.xlu2 %705 }
 0x131   : > { %v796_v24 = vsub.f32 %v2236_v28, %v706_v37  ;;  %v797_v25 = vsub.f32 %v2238_v29, %v706_v37  ;;  %v2382_v40 = vpop.f32.mrf.mxu0  ;;  %v2384_v41 = vpop.f32.mrf.mxu1 }
 0x132   : > { %v749_v44 = vmax.f32 %v2382_v40, %v2384_v41 }
 0x133   : > { %v1921_v47 = vpop.eup %1920  ;;  %v868_v48 = vmul.f32 1.442695, %v796_v24  ;;  %v870_v49 = vmul.f32 1.442695, %v797_v25 }
 0x134   : > { %v1923_v50 = vpop.eup %1922  ;;  %750 = vmax.xlane.f32.xlu1 %v749_v44  ;;  %v1078_v53 = vpack.c.bf16 %v1921_v47, %v1917_v16 }
 0x135   : > { %1924 = vpow2.f32 %v868_v48  ;;  %v1079_v54 = vpack.c.bf16 %v1923_v50, %v1919_v27  ;;  %v2388_v55 = vadd.f32 %v1923_v50, %v1921_v47 }
 0x136   : > { %1926 = vpow2.f32 %v870_v49  ;;  %1217 = vmatmul.bf16.gmra.mxu2 %v1078_v53 }
 0x137   : > { %1306 = vmatmul.bf16.gmra.mxu3 %v1079_v54 }
 0x138   : > { %v709_v28 = vpop.xlane.xlu2 %708 }
 0x139   : > { %v798_v29 = vsub.f32 %v2244_v31, %v709_v28  ;;  %v799_v57 = vsub.f32 %v2246_v32, %v709_v28  ;;  %v2392_v17 = vpop.f32.mrf.mxu0  ;;  %v2394_v18 = vpop.f32.mrf.mxu1 }
 0x13a   : > { %v752_v62 = vmax.f32 %v2392_v17, %v2394_v18 }
 0x13b   : > { %v1925_v63 = vpop.eup %1924  ;;  %v872_v0 = vmul.f32 1.442695, %v798_v29  ;;  %v874_v1 = vmul.f32 1.442695, %v799_v57 }
 0x13c   : > { %v1927_v4 = vpop.eup %1926  ;;  %753 = vmax.xlane.f32.xlu2 %v752_v62 }
 0x13d   : > { %1928 = vpow2.f32 %v872_v0  ;;  %v2398_v5 = vadd.f32 %v1927_v4, %v1925_v63 }
 0x13e   : > { %1930 = vpow2.f32 %v874_v1 }
 0x140   : > { %v712_v6 = vpop.xlane.xlu0 %711 }
 0x141   : > { %v800_v31 = vsub.f32 %v2251_v35, %v712_v6  ;;  %v801_v32 = vsub.f32 %v2253_v36, %v712_v6  ;;  %v2402_v21 = vpop.f32.mrf.mxu0  ;;  %v2404_v22 = vpop.f32.mrf.mxu1 }
 0x142   : > { %v755_v8 = vmax.f32 %v2402_v21, %v2404_v22 }
 0x143   : > { %v1929_v13 = vpop.eup %1928  ;;  %v876_v16 = vmul.f32 1.442695, %v800_v31  ;;  %v878_v23 = vmul.f32 1.442695, %v801_v32 }
 0x144   : > { %v1931_v26 = vpop.eup %1930  ;;  %756 = vmax.xlane.f32.xlu0 %v755_v8  ;;  %v1080_v27 = vpack.c.bf16 %v1929_v13, %v1925_v63 }
 0x145   : > { %1932 = vpow2.f32 %v876_v16  ;;  %v1081_v37 = vpack.c.bf16 %v1931_v26, %v1927_v4  ;;  %v2408_v24 = vadd.f32 %v1931_v26, %v1929_v13 }
 0x146   : > { %1934 = vpow2.f32 %v878_v23  ;;  %1222 = vmatmul.bf16.gmra.mxu2 %v1080_v27 }
 0x147   : > { %1311 = vmatmul.bf16.gmra.mxu3 %v1081_v37  ;;  %v715_v35 = vpop.xlane.xlu1 %714 }
 0x148   : > { %v802_v36 = vsub.f32 %v2259_v38, %v715_v35  ;;  %v803_v25 = vsub.f32 %v2261_v39, %v715_v35 }
 0x149   : > { %v2412_v44 = vpop.f32.mrf.mxu0  ;;  %v2414_v47 = vpop.f32.mrf.mxu1 }
 0x14a   : > { %v880_v48 = vmul.f32 1.442695, %v802_v36  ;;  %v882_v49 = vmul.f32 1.442695, %v803_v25  ;;  %v758_v50 = vmax.f32 %v2412_v44, %v2414_v47 }
 0x14b   : > { %v1933_v53 = vpop.eup %1932 }
 0x14c   : > { %v1935_v54 = vpop.eup %1934  ;;  %1936 = vpow2.f32 %v880_v48  ;;  %759 = vmax.xlane.f32.xlu1 %v758_v50 }
 0x14d   : > { %1938 = vpow2.f32 %v882_v49  ;;  %v2418_v28 = vadd.f32 %v1935_v54, %v1933_v53 }
 0x150   : > { %v718_v29 = vpop.xlane.xlu2 %717 }
 0x151   : > { %v804_v38 = vsub.f32 %v2266_v42, %v718_v29  ;;  %v805_v39 = vsub.f32 %v2268_v43, %v718_v29  ;;  %v2422_v57 = vpop.f32.mrf.mxu0  ;;  %v2424_v62 = vpop.f32.mrf.mxu1 }
 0x152   : > { %v1937_v63 = vpop.eup %1936  ;;  %v761_v0 = vmax.f32 %v2422_v57, %v2424_v62 }
 0x153   : > { %v1939_v1 = vpop.eup %1938  ;;  %v884_v4 = vmul.f32 1.442695, %v804_v38  ;;  %v886_v6 = vmul.f32 1.442695, %v805_v39  ;;  %v1082_v31 = vpack.c.bf16 %v1937_v63, %v1933_v53 }
 0x154   : > { %762 = vmax.xlane.f32.xlu2 %v761_v0  ;;  %v1083_v32 = vpack.c.bf16 %v1939_v1, %v1935_v54  ;;  %v2428_v8 = vadd.f32 %v1939_v1, %v1937_v63 }
 0x155   : > { %1940 = vpow2.f32 %v884_v4 }
 0x156   : > { %1942 = vpow2.f32 %v886_v6  ;;  %1227 = vmatmul.bf16.gmra.mxu2 %v1082_v31 }
 0x157   : > { %1316 = vmatmul.bf16.gmra.mxu3 %v1083_v32  ;;  %v721_v42 = vpop.xlane.xlu0 %720 }
 0x158   : > { %v806_v43 = vsub.f32 %v2281_v45, %v721_v42  ;;  %v807_v13 = vsub.f32 %v2283_v46, %v721_v42 }
 0x159   : > { %v2432_v16 = vpop.f32.mrf.mxu0  ;;  %v2434_v23 = vpop.f32.mrf.mxu1 }
 0x15a   : > { %v888_v26 = vmul.f32 1.442695, %v806_v43  ;;  %v890_v27 = vmul.f32 1.442695, %v807_v13  ;;  %v764_v37 = vmax.f32 %v2432_v16, %v2434_v23 }
 0x15b   : > { %v1941_v35 = vpop.eup %1940 }
 0x15c   : > { %v1943_v36 = vpop.eup %1942  ;;  %1944 = vpow2.f32 %v888_v26  ;;  %765 = vmax.xlane.f32.xlu0 %v764_v37 }
 0x15d   : > { %1946 = vpow2.f32 %v890_v27  ;;  %v2438_v25 = vadd.f32 %v1943_v36, %v1941_v35 }
 0x160   : > { %v724_v48 = vpop.xlane.xlu1 %723 }
 0x161   : > { %v2440_v45 = vpop.f32.mrf.mxu0  ;;  %v2442_v46 = vpop.f32.mrf.mxu1  ;;  %v808_v50 = vsub.f32 %v2290_v51, %v724_v48  ;;  %v809_v29 = vsub.f32 %v2292_v52, %v724_v48 }
 0x162   : > { %v1945_v49 = vpop.eup %1944  ;;  %v767_v53 = vmax.f32 %v2440_v45, %v2442_v46 }
 0x163   : > { %v1947_v54 = vpop.eup %1946  ;;  %v1084_v38 = vpack.c.bf16 %v1945_v49, %v1941_v35  ;;  %v892_v0 = vmul.f32 1.442695, %v808_v50  ;;  %v894_v1 = vmul.f32 1.442695, %v809_v29 }
 0x164   : > { %768 = vmax.xlane.f32.xlu1 %v767_v53  ;;  %v1085_v39 = vpack.c.bf16 %v1947_v54, %v1943_v36  ;;  %v2448_v63 = vadd.f32 %v1947_v54, %v1945_v49 }
 0x165   : > { %1948 = vpow2.f32 %v892_v0 }
 0x166   : > { %1232 = vmatmul.bf16.gmra.mxu2 %v1084_v38  ;;  %1950 = vpow2.f32 %v894_v1 }
 0x167   : > { %1321 = vmatmul.bf16.gmra.mxu3 %v1085_v39  ;;  %v727_v4 = vpop.xlane.xlu2 %726 }
 0x168   : > { %v810_v6 = vsub.f32 %v2302_v58, %v727_v4  ;;  %v811_v51 = vsub.f32 %v2304_v59, %v727_v4 }
 0x169   : > { %v2452_v31 = vpop.f32.mrf.mxu0  ;;  %v2454_v32 = vpop.f32.mrf.mxu1 }
 0x16a   : > { %v896_v52 = vmul.f32 1.442695, %v810_v6  ;;  %v898_v42 = vmul.f32 1.442695, %v811_v51  ;;  %v770_v43 = vmax.f32 %v2452_v31, %v2454_v32 }
 0x16b   : > { %v2458_v13 = vpop.eup %1948 }
 0x16c   : > { %1952 = vpow2.f32 %v896_v52  ;;  %771 = vmax.xlane.f32.xlu2 %v770_v43  ;;  %v2460_v58 = vpop.eup %1950 }
 0x16d   : > { %1954 = vpow2.f32 %v898_v42 }
 0x170   : > { %v730_v26 = vpop.xlane.xlu0 %729 }
 0x171   : > { %v2462_v59 = vpop.f32.mrf.mxu0  ;;  %v2464_v27 = vpop.f32.mrf.mxu1  ;;  %v812_v35 = vsub.f32 %v2313_v2, %v730_v26  ;;  %v813_v49 = vsub.f32 %v2315_v3, %v730_v26 }
 0x172   : > { %v1953_v37 = vpop.eup %1952  ;;  %v773_v36 = vmax.f32 %v2462_v59, %v2464_v27 }
 0x173   : > { %v1955_v48 = vpop.eup %1954  ;;  %v1086_v50 = vpack.c.bf16 %v1953_v37, %v2458_v13  ;;  %v900_v29 = vmul.f32 1.442695, %v812_v35  ;;  %v902_v38 = vmul.f32 1.442695, %v813_v49 }
 0x174   : > { %774 = vmax.xlane.f32.xlu0 %v773_v36  ;;  %v1087_v53 = vpack.c.bf16 %v1955_v48, %v2460_v58  ;;  %v2472_v54 = vadd.f32 %v1955_v48, %v1953_v37 }
 0x175   : > { %1956 = vpow2.f32 %v900_v29 }
 0x176   : > { %1237 = vmatmul.bf16.gmra.mxu2 %v1086_v50  ;;  %1958 = vpow2.f32 %v902_v38 }
 0x177   : > { %1326 = vmatmul.bf16.gmra.mxu3 %v1087_v53  ;;  %v733_v39 = vpop.xlane.xlu1 %732 }
 0x178   : > { %v814_v2 = vsub.f32 %v2325_v9, %v733_v39  ;;  %v815_v0 = vsub.f32 %v2327_v10, %v733_v39 }
 0x179   : > { %v2476_v1 = vpop.f32.mrf.mxu0  ;;  %v2478_v4 = vpop.f32.mrf.mxu1 }
 0x17a   : > { %v904_v3 = vmul.f32 1.442695, %v814_v2  ;;  %v906_v6 = vmul.f32 1.442695, %v815_v0  ;;  %v776_v51 = vmax.f32 %v2476_v1, %v2478_v4 }
 0x17b   : > { %v2482_v52 = vpop.eup %1956 }
 0x17c   : > { %1960 = vpow2.f32 %v904_v3  ;;  %777 = vmax.xlane.f32.xlu1 %v776_v51  ;;  %v2484_v9 = vpop.eup %1958 }
 0x17d   : > { %1962 = vpow2.f32 %v906_v6 }
 0x180   : > { %v736_v42 = vpop.xlane.xlu2 %735 }
 0x181   : > { %v2486_v10 = vpop.f32.mrf.mxu0  ;;  %v2488_v43 = vpop.f32.mrf.mxu1  ;;  %v816_v37 = vsub.f32 %v2334_v19, %v736_v42  ;;  %v817_v48 = vsub.f32 %v2336_v20, %v736_v42 }
 0x182   : > { %v2490_v26 = vpop.eup %1960  ;;  %v779_v35 = vmax.f32 %v2486_v10, %v2488_v43 }
 0x183   : > { %v2495_v36 = vpop.eup %1962  ;;  %v1088_v49 = vpack.c.bf16 %v2490_v26, %v2482_v52  ;;  %v908_v53 = vmul.f32 1.442695, %v816_v37  ;;  %v910_v29 = vmul.f32 1.442695, %v817_v48 }
 0x184   : > { %780 = vmax.xlane.f32.xlu2 %v779_v35  ;;  %v1089_v50 = vpack.c.bf16 %v2495_v36, %v2484_v9 }
 0x185   : > { %1964 = vpow2.f32 %v908_v53 }
 0x186   : > { %1242 = vmatmul.bf16.gmra.mxu2 %v1088_v49  ;;  %1966 = vpow2.f32 %v910_v29 }
 0x187   : > { %1331 = vmatmul.bf16.gmra.mxu3 %v1089_v50  ;;  %v739_v38 = vpop.xlane.xlu0 %738 }
 0x188   : > { %v818_v19 = vsub.f32 %v2344_v33, %v739_v38  ;;  %v819_v39 = vsub.f32 %v2346_v34, %v739_v38 }
 0x189   : > { %v2504_v2 = vpop.f32.mrf.mxu0  ;;  %v2506_v0 = vpop.f32.mrf.mxu1 }
 0x18a   : > { %v912_v20 = vmul.f32 1.442695, %v818_v19  ;;  %v914_v3 = vmul.f32 1.442695, %v819_v39  ;;  %v782_v6 = vmax.f32 %v2504_v2, %v2506_v0 }
 0x18b   : > { %v2511_v33 = vpop.eup %1964 }
 0x18c   : > { %1968 = vpow2.f32 %v912_v20  ;;  %981 = vadd.xlane.f32.xlu2 %v2358_v56  ;;  %783 = vmax.xlane.f32.xlu0 %v782_v6  ;;  %v2513_v34 = vpop.eup %1966 }
 0x18d   : > { %1970 = vpow2.f32 %v914_v3 }
 0x18f   : > { %v742_v51 = vpop.xlane.xlu1 %741 }
 0x190   : > { %v820_v48 = vsub.f32 %v2352_v14, %v742_v51  ;;  %v821_v56 = vsub.f32 %v2354_v15, %v742_v51 }
 0x191   : > { %v2515_v42 = vpop.f32.mrf.mxu0  ;;  %v2517_v37 = vpop.f32.mrf.mxu1 }
 0x192   : > { %v2519_v35 = vpop.eup %1968  ;;  %v785_v49 = vmax.f32 %v2515_v42, %v2517_v37  ;;  %v916_v38 = vmul.f32 1.442695, %v820_v48  ;;  %v918_v14 = vmul.f32 1.442695, %v821_v56 }
 0x193   : > { %v2524_v50 = vpop.eup %1970  ;;  %v1090_v53 = vpack.c.bf16 %v2519_v35, %v2511_v33 }
 0x194   : > { %990 = vadd.xlane.f32.xlu2 %v2388_v55  ;;  %984 = vadd.xlane.f32.xlu0 %v2368_v7  ;;  %v1091_v29 = vpack.c.bf16 %v2524_v50, %v2513_v34  ;;  %1972 = vpow2.f32 %v916_v38 }
 0x195   : > { %786 = vmax.xlane.f32.xlu1 %v785_v49  ;;  %1974 = vpow2.f32 %v918_v14 }
 0x196   : > { %1247 = vmatmul.bf16.gmra.mxu2 %v1090_v53 }
 0x197   : > { %1336 = vmatmul.bf16.gmra.mxu3 %v1091_v29  ;;  %v745_v19 = vpop.xlane.xlu2 %744  ;;  %v1010_v29 = vadd.f32 %v2460_v58, %v2458_v13 }
 0x198   : > { %v822_v39 = vsub.f32 %v2362_v60, %v745_v19  ;;  %v823_v15 = vsub.f32 %v2364_v61, %v745_v19 }
 0x19a   : > { %v920_v20 = vmul.f32 1.442695, %v822_v39  ;;  %v922_v3 = vmul.f32 1.442695, %v823_v15  ;;  %v1973_v55 = vpop.eup %1972 }
 0x19b   : > { %v1975_v6 = vpop.eup %1974 }
 0x19c   : > { %1976 = vpow2.f32 %v920_v20  ;;  %999 = vadd.xlane.f32.xlu2 %v2418_v28  ;;  %993 = vadd.xlane.f32.xlu0 %v2398_v5 }
 0x19d   : > { %1978 = vpow2.f32 %v922_v3  ;;  %987 = vadd.xlane.f32.xlu1 %v2378_v30 }
 0x19f   : > { %v748_v7 = vpop.xlane.xlu0 %747 }
 0x1a0   : > { %v824_v60 = vsub.f32 %v2372_v11, %v748_v7  ;;  %v825_v48 = vsub.f32 %v2374_v12, %v748_v7 }
 0x1a2   : > { %v2538_v51 = vpop.eup %1976  ;;  %v924_v30 = vmul.f32 1.442695, %v824_v60  ;;  %v926_v28 = vmul.f32 1.442695, %v825_v48 }
 0x1a3   : > { %v2541_v61 = vpop.eup %1978  ;;  %v1092_v49 = vpack.c.bf16 %v2538_v51, %v1973_v55 }
 0x1a4   : > { %1008 = vadd.xlane.f32.xlu2 %v2448_v63  ;;  %1002 = vadd.xlane.f32.xlu0 %v2428_v8  ;;  %v1093_v5 = vpack.c.bf16 %v2541_v61, %v1975_v6  ;;  %1980 = vpow2.f32 %v924_v30 }
 0x1a5   : > { %996 = vadd.xlane.f32.xlu1 %v2408_v24  ;;  %v1016_v24 = vadd.f32 %v2484_v9, %v2482_v52  ;;  %1982 = vpow2.f32 %v926_v28  ;;  %v1025_v52 = vadd.f32 %v2524_v50, %v2519_v35  ;;  %v1019_v9 = vadd.f32 %v2495_v36, %v2490_v26 }
 0x1a6   : > { %1252 = vmatmul.bf16.gmra.mxu2 %v1092_v49  ;;  %v1028_v50 = vadd.f32 %v1975_v6, %v1973_v55 }
 0x1a7   : > { %1341 = vmatmul.bf16.gmra.mxu3 %v1093_v5  ;;  %v751_v56 = vpop.xlane.xlu1 %750 }
 0x1a8   : > { %v826_v11 = vsub.f32 %v2382_v40, %v751_v56  ;;  %v827_v53 = vsub.f32 %v2384_v41, %v751_v56 }
 0x1a9   : > { %v1213_v12 = vpop.f32.mrf.mxu2 }
 0x1aa   : > { %v928_v63 = vmul.f32 1.442695, %v826_v11  ;;  %v930_v8 = vmul.f32 1.442695, %v827_v53  ;;  %v1302_v38 = vpop.f32.mrf.mxu3  ;;  %v1981_v41 = vpop.eup %1980 }
 0x1ab   : > { %v2555_v14 = vadd.f32 %v1302_v38, %v1213_v12  ;;  %v1983_v19 = vpop.eup %1982 }
 0x1ac   : > { %1984 = vpow2.f32 %v928_v63  ;;  %1017 = vadd.xlane.f32.xlu2 %v1016_v24  ;;  %1011 = vadd.xlane.f32.xlu0 %v1010_v29  ;;  %v1034_v28 = vadd.f32 %v1983_v19, %v1981_v41 }
 0x1ad   : > { %1986 = vpow2.f32 %v930_v8  ;;  %1005 = vadd.xlane.f32.xlu1 %v2438_v25 }
 0x1af   : > { %v754_v40 = vpop.xlane.xlu2 %753 }
 0x1b0   : > { %v828_v39 = vsub.f32 %v2392_v17, %v754_v40  ;;  %v829_v3 = vsub.f32 %v2394_v18, %v754_v40 }
 0x1b1   : > { %v1215_v13 = vpop.f32.mrf.mxu2 }
 0x1b2   : > { %v1985_v58 = vpop.eup %1984  ;;  %v1304_v15 = vpop.f32.mrf.mxu3  ;;  %v932_v48 = vmul.f32 1.442695, %v828_v39  ;;  %v934_v17 = vmul.f32 1.442695, %v829_v3 }
 0x1b3   : > { %v1987_v20 = vpop.eup %1986  ;;  %v2564_v7 = vadd.f32 %v1304_v15, %v1215_v13  ;;  %v1094_v25 = vpack.c.bf16 %v1985_v58, %v1981_v41 }
 0x1b4   : > { %1026 = vadd.xlane.f32.xlu2 %v1025_v52  ;;  %1020 = vadd.xlane.f32.xlu0 %v1019_v9  ;;  %v1095_v60 = vpack.c.bf16 %v1987_v20, %v1983_v19  ;;  %1988 = vpow2.f32 %v932_v48  ;;  %v1037_v38 = vadd.f32 %v1987_v20, %v1985_v58 }
 0x1b5   : > { %1014 = vadd.xlane.f32.xlu1 %v2472_v54  ;;  %1990 = vpow2.f32 %v934_v17  ;;  %v1022_v54 = vadd.f32 %v2513_v34, %v2511_v33  ;;  %v1031_v34 = vadd.f32 %v2541_v61, %v2538_v51 }
 0x1b6   : > { %1257 = vmatmul.bf16.gmra.mxu2 %v1094_v25 }
 0x1b7   : > { %1346 = vmatmul.bf16.gmra.mxu3 %v1095_v60  ;;  %v757_v49 = vpop.xlane.xlu0 %756 }
 0x1b8   : > { %v830_v35 = vsub.f32 %v2402_v21, %v757_v49  ;;  %v831_v26 = vsub.f32 %v2404_v22, %v757_v49 }
 0x1b9   : > { %v1218_v36 = vpop.f32.mrf.mxu2 }
 0x1ba   : > { %v936_v18 = vmul.f32 1.442695, %v830_v35  ;;  %v938_v5 = vmul.f32 1.442695, %v831_v26  ;;  %v1307_v30 = vpop.f32.mrf.mxu3  ;;  %v1989_v22 = vpop.eup %1988 }
 0x1bb   : > { %v2569_v56 = vadd.f32 %v1307_v30, %v1218_v36  ;;  %v1991_v11 = vpop.eup %1990 }
 0x1bc   : > { %1992 = vpow2.f32 %v936_v18  ;;  %1035 = vadd.xlane.f32.xlu2 %v1034_v28  ;;  %1029 = vadd.xlane.f32.xlu0 %v1028_v50  ;;  %v1040_v20 = vadd.f32 %v1991_v11, %v1989_v22 }
 0x1bd   : > { %1994 = vpow2.f32 %v938_v5  ;;  %1023 = vadd.xlane.f32.xlu1 %v1022_v54 }
 0x1bf   : > { %v760_v21 = vpop.xlane.xlu1 %759 }
 0x1c0   : > { %v832_v55 = vsub.f32 %v2412_v44, %v760_v21  ;;  %v833_v6 = vsub.f32 %v2414_v47, %v760_v21 }
 0x1c1   : > { %v1220_v53 = vpop.f32.mrf.mxu2 }
 0x1c2   : > { %v1993_v12 = vpop.eup %1992  ;;  %v940_v29 = vmul.f32 1.442695, %v832_v55  ;;  %v942_v63 = vmul.f32 1.442695, %v833_v6  ;;  %v1309_v8 = vpop.f32.mrf.mxu3 }
 0x1c3   : > { %v1995_v24 = vpop.eup %1994  ;;  %v2575_v33 = vadd.f32 %v1309_v8, %v1220_v53  ;;  %v1096_v40 = vpack.c.bf16 %v1993_v12, %v1989_v22 }
 0x1c4   : > { %1996 = vpow2.f32 %v940_v29  ;;  %1038 = vadd.xlane.f32.xlu0 %v1037_v38  ;;  %v1097_v41 = vpack.c.bf16 %v1995_v24, %v1991_v11  ;;  %v1043_v44 = vadd.f32 %v1995_v24, %v1993_v12 }
 0x1c5   : > { %1998 = vpow2.f32 %v942_v63  ;;  %1032 = vadd.xlane.f32.xlu1 %v1031_v34 }
 0x1c6   : > { %1262 = vmatmul.bf16.gmra.mxu2 %v1096_v40  ;;  %1044 = vadd.xlane.f32.xlu2 %v1043_v44 }
 0x1c7   : > { %1351 = vmatmul.bf16.gmra.mxu3 %v1097_v41  ;;  %v763_v47 = vpop.xlane.xlu2 %762 }
 0x1c8   : > { %v834_v19 = vsub.f32 %v2422_v57, %v763_v47  ;;  %v835_v13 = vsub.f32 %v2424_v62, %v763_v47 }
 0x1c9   : > { %v1223_v58 = vpop.f32.mrf.mxu2 }
 0x1ca   : > { %v1997_v39 = vpop.eup %1996  ;;  %v944_v15 = vmul.f32 1.442695, %v834_v19  ;;  %v946_v52 = vmul.f32 1.442695, %v835_v13  ;;  %v1312_v51 = vpop.f32.mrf.mxu3 }
 0x1cb   : > { %v1999_v61 = vpop.eup %1998  ;;  %v2581_v9 = vadd.f32 %v1312_v51, %v1223_v58 }
 0x1cc   : > { %2000 = vpow2.f32 %v944_v15  ;;  %v1046_v3 = vadd.f32 %v1999_v61, %v1997_v39 }
 0x1cd   : > { %2002 = vpow2.f32 %v946_v52  ;;  %1041 = vadd.xlane.f32.xlu1 %v1040_v20 }
 0x1ce   : > { %1047 = vadd.xlane.f32.xlu0 %v1046_v3 }
 0x1cf   : > { %v766_v25 = vpop.xlane.xlu0 %765 }
 0x1d0   : > { %v836_v60 = vsub.f32 %v2432_v16, %v766_v25  ;;  %v837_v57 = vsub.f32 %v2434_v23, %v766_v25 }
 0x1d1   : > { %v1225_v62 = vpop.f32.mrf.mxu2 }
 0x1d2   : > { %v2001_v48 = vpop.eup %2000  ;;  %v948_v17 = vmul.f32 1.442695, %v836_v60  ;;  %v950_v49 = vmul.f32 1.442695, %v837_v57  ;;  %v1314_v35 = vpop.f32.mrf.mxu3 }
 0x1d3   : > { %v2003_v26 = vpop.eup %2002  ;;  %v2585_v36 = vadd.f32 %v1314_v35, %v1225_v62  ;;  %v1098_v50 = vpack.c.bf16 %v2001_v48, %v1997_v39 }
 0x1d4   : > { %2004 = vpow2.f32 %v948_v17  ;;  %v1099_v18 = vpack.c.bf16 %v2003_v26, %v1999_v61  ;;  %v1049_v5 = vadd.f32 %v2003_v26, %v2001_v48 }
 0x1d5   : > { %2006 = vpow2.f32 %v950_v49 }
 0x1d6   : > { %1267 = vmatmul.bf16.gmra.mxu2 %v1098_v50  ;;  %1050 = vadd.xlane.f32.xlu1 %v1049_v5 }
 0x1d7   : > { %1356 = vmatmul.bf16.gmra.mxu3 %v1099_v18  ;;  %v769_v30 = vpop.xlane.xlu1 %768 }
 0x1d8   : > { %v838_v16 = vsub.f32 %v2440_v45, %v769_v30  ;;  %v839_v23 = vsub.f32 %v2442_v46, %v769_v30 }
 0x1d9   : > { %v2589_v28 = vpop.f32.mrf.mxu2 }
 0x1da   : > { %v2005_v54 = vpop.eup %2004  ;;  %v952_v21 = vmul.f32 1.442695, %v838_v16  ;;  %v954_v22 = vmul.f32 1.442695, %v839_v23  ;;  %v2591_v55 = vpop.f32.mrf.mxu3 }
 0x1db   : > { %v2007_v6 = vpop.eup %2006 }
 0x1dc   : > { %2008 = vpow2.f32 %v952_v21  ;;  %v1052_v11 = vadd.f32 %v2007_v6, %v2005_v54 }
 0x1dd   : > { %2010 = vpow2.f32 %v954_v22 }
 0x1de   : > { %1053 = vadd.xlane.f32.xlu2 %v1052_v11 }
 0x1df   : > { %v772_v53 = vpop.xlane.xlu2 %771 }
 0x1e0   : > { %v840_v12 = vsub.f32 %v2452_v31, %v772_v53  ;;  %v841_v29 = vsub.f32 %v2454_v32, %v772_v53 }
 0x1e1   : > { %v2595_v45 = vpop.f32.mrf.mxu2 }
 0x1e2   : > { %v2009_v46 = vpop.eup %2008  ;;  %v956_v63 = vmul.f32 1.442695, %v840_v12  ;;  %v958_v8 = vmul.f32 1.442695, %v841_v29  ;;  %v2597_v38 = vpop.f32.mrf.mxu3 }
 0x1e3   : > { %v2011_v24 = vpop.eup %2010  ;;  %v1100_v34 = vpack.c.bf16 %v2009_v46, %v2005_v54 }
 0x1e4   : > { %2012 = vpow2.f32 %v956_v63  ;;  %v1101_v40 = vpack.c.bf16 %v2011_v24, %v2007_v6  ;;  %v1055_v41 = vadd.f32 %v2011_v24, %v2009_v46  ;;  %v1446_v63 = vld [vmem:[%s2627_s7] sm:$0xff] }
 0x1e5   : > { %2014 = vpow2.f32 %v958_v8 }
 0x1e6   : > { %1272 = vmatmul.bf16.gmra.mxu2 %v1100_v34  ;;  %1056 = vadd.xlane.f32.xlu0 %v1055_v41 }
 0x1e7   : > { %1361 = vmatmul.bf16.gmra.mxu3 %v1101_v40  ;;  %v775_v44 = vpop.xlane.xlu0 %774 }
 0x1e8   : > { %v842_v31 = vsub.f32 %v2462_v59, %v775_v44  ;;  %v843_v32 = vsub.f32 %v2464_v27, %v775_v44 }
 0x1e9   : > { %v2601_v47 = vpop.f32.mrf.mxu2 }
 0x1ea   : > { %v2013_v19 = vpop.eup %2012  ;;  %v960_v13 = vmul.f32 1.442695, %v842_v31  ;;  %v962_v58 = vmul.f32 1.442695, %v843_v32  ;;  %v2603_v39 = vpop.f32.mrf.mxu3 }
 0x1eb   : > { %v2015_v15 = vpop.eup %2014 }
 0x1ec   : > { %2016 = vpow2.f32 %v960_v13  ;;  %v1058_v52 = vadd.f32 %v2015_v15, %v2013_v19 }
 0x1ed   : > { %2018 = vpow2.f32 %v962_v58 }
 0x1ee   : > { %1059 = vadd.xlane.f32.xlu1 %v1058_v52 }
 0x1ef   : > { %v778_v51 = vpop.xlane.xlu1 %777 }
 0x1f0   : > { %v844_v61 = vsub.f32 %v2476_v1, %v778_v51  ;;  %v845_v20 = vsub.f32 %v2478_v4, %v778_v51 }
 0x1f1   : > { %v2607_v59 = vpop.f32.mrf.mxu2 }
 0x1f2   : > { %v2017_v27 = vpop.eup %2016  ;;  %v964_v3 = vmul.f32 1.442695, %v844_v61  ;;  %v966_v25 = vmul.f32 1.442695, %v845_v20  ;;  %v2609_v60 = vpop.f32.mrf.mxu3  ;;  %v1449_v61 = vld [vmem:[%s2627_s7 + $0x18] sm:$0xff]  ;;  %v1447_v20 = vld [vmem:[%s2627_s7 + $0x8] sm:$0xff] }
 0x1f3   : > { %v2019_v57 = vpop.eup %2018  ;;  %v1102_v62 = vpack.c.bf16 %v2017_v27, %v2013_v19 }
 0x1f4   : > { %2020 = vpow2.f32 %v964_v3  ;;  %v1103_v48 = vpack.c.bf16 %v2019_v57, %v2015_v15  ;;  %v1061_v17 = vadd.f32 %v2019_v57, %v2017_v27 }
 0x1f5   : > { %2022 = vpow2.f32 %v966_v25 }
 0x1f6   : > { %1277 = vmatmul.bf16.gmra.mxu2 %v1102_v62  ;;  %1062 = vadd.xlane.f32.xlu2 %v1061_v17 }
 0x1f7   : > { %1366 = vmatmul.bf16.gmra.mxu3 %v1103_v48  ;;  %v781_v1 = vpop.xlane.xlu2 %780 }
 0x1f8   : > { %v846_v4 = vsub.f32 %v2486_v10, %v781_v1  ;;  %v847_v49 = vsub.f32 %v2488_v43, %v781_v1 }
 0x1f9   : > { %v2613_v35 = vpop.f32.mrf.mxu2 }
 0x1fa   : > { %v2021_v26 = vpop.eup %2020  ;;  %v968_v50 = vmul.f32 1.442695, %v846_v4  ;;  %v970_v18 = vmul.f32 1.442695, %v847_v49  ;;  %v2615_v5 = vpop.f32.mrf.mxu3 }
 0x1fb   : > { %v2023_v30 = vpop.eup %2022 }
 0x1fc   : > { %2024 = vpow2.f32 %v968_v50  ;;  %v1064_v16 = vadd.f32 %v2023_v30, %v2021_v26 }
 0x1fd   : > { %2026 = vpow2.f32 %v970_v18 }
 0x1fe   : > { %1065 = vadd.xlane.f32.xlu0 %v1064_v16 }
 0x1ff   : > { %v982_v23 = vpop.xlane.xlu2 %981  ;;  %v784_v54 = vpop.xlane.xlu0 %783 }
 0x200   : > { %2028 = vrcp.f32 %v982_v23  ;;  %v848_v10 = vsub.f32 %v2504_v2, %v784_v54  ;;  %v849_v43 = vsub.f32 %v2506_v0, %v784_v54  ;;  %v1450_v54 = vld [vmem:[%s2627_s7 + $0x20] sm:$0xff] }
 0x201   : > { %v2620_v21 = vpop.f32.mrf.mxu2 }
 0x202   : > { %v2025_v22 = vpop.eup %2024  ;;  %v972_v6 = vmul.f32 1.442695, %v848_v10  ;;  %v974_v11 = vmul.f32 1.442695, %v849_v43  ;;  %v2622_v53 = vpop.f32.mrf.mxu3 }
 0x203   : > { %v2027_v12 = vpop.eup %2026  ;;  %v1104_v29 = vpack.c.bf16 %v2025_v22, %v2021_v26 }
 0x204   : > { %2030 = vpow2.f32 %v972_v6  ;;  %v1105_v46 = vpack.c.bf16 %v2027_v12, %v2023_v30  ;;  %v1067_v2 = vadd.f32 %v2027_v12, %v2025_v22  ;;  %v1452_v30 = vld [vmem:[%s2627_s7 + $0x30] sm:$0xff] }
 0x205   : > { %2032 = vpow2.f32 %v974_v11  ;;  %v1448_v11 = vld [vmem:[%s2627_s7 + $0x10] sm:$0xff] }
 0x206   : > { %v2029_v0 = vpop.eup %2028  ;;  %1282 = vmatmul.bf16.gmra.mxu2 %v1104_v29  ;;  %1068 = vadd.xlane.f32.xlu1 %v1067_v2 }
 0x207   : > { %v1414_v8 = vmul.f32 %v2029_v0, %v2555_v14  ;;  %1371 = vmatmul.bf16.gmra.mxu3 %v1105_v46  ;;  %v991_v24 = vpop.xlane.xlu2 %990  ;;  %v985_v34 = vpop.xlane.xlu0 %984 }
 0x208   : > { %2034 = vrcp.f32 %v991_v24  ;;  %v787_v40 = vpop.xlane.xlu1 %786 }
 0x209   : > { %v1478_v41 = vadd.f32 %v1446_v63, %v1414_v8  ;;  %2036 = vrcp.f32 %v985_v34  ;;  %v850_v44 = vsub.f32 %v2515_v42, %v787_v40  ;;  %v851_v31 = vsub.f32 %v2517_v37, %v787_v40  ;;  %v2638_v14 = vpop.f32.mrf.mxu2  ;;  %v1455_v8 = vld [vmem:[%s2627_s7 + $0x48] sm:$0xff]  ;;  %v1453_v40 = vld [vmem:[%s2627_s7 + $0x38] sm:$0xff] }
 0x20a   : > { %v2031_v32 = vpop.eup %2030  ;;  %v2640_v19 = vpop.f32.mrf.mxu3  ;;  %v1320_v63 = vadd.f32 %v2597_v38, %v2595_v45 }
 0x20b   : > { %v2033_v13 = vpop.eup %2032  ;;  %1511 = vst.msk [vmem:[%s2634_s10] sm:$0xff] %vm1510_vm2, %v1478_v41  ;;  %v976_v58 = vmul.f32 1.442695, %v850_v44  ;;  %v978_v15 = vmul.f32 1.442695, %v851_v31 }
 0x20c   : > { %v1070_v52 = vadd.f32 %v2033_v13, %v2031_v32 }
 0x20d   : > { %2038 = vpow2.f32 %v976_v58 }
 0x20e   : > { %v2035_v51 = vpop.eup %2034  ;;  %2040 = vpow2.f32 %v978_v15  ;;  %1071 = vadd.xlane.f32.xlu2 %v1070_v52 }
 0x20f   : > { %v2037_v42 = vpop.eup %2036  ;;  %v1417_v37 = vmul.f32 %v2035_v51, %v2575_v33  ;;  %v1000_v27 = vpop.xlane.xlu2 %999  ;;  %v1333_v51 = vadd.f32 %v2640_v19, %v2638_v14  ;;  %v1454_v19 = vld [vmem:[%s2627_s7 + $0x40] sm:$0xff] }
 0x210   : > { %v994_v3 = vpop.xlane.xlu0 %993  ;;  %v1415_v25 = vmul.f32 %v2037_v42, %v2564_v7  ;;  %2042 = vrcp.f32 %v1000_v27  ;;  %v988_v57 = vpop.xlane.xlu1 %987  ;;  %v1318_v7 = vadd.f32 %v2591_v55, %v2589_v28  ;;  %v1458_v42 = vld [vmem:[%s2627_s7 + $0x60] sm:$0xff] }
 0x211   : > { %v1481_v62 = vadd.f32 %v1449_v61, %v1417_v37  ;;  %2044 = vrcp.f32 %v994_v3  ;;  %v2648_v48 = vpop.f32.mrf.mxu2  ;;  %v1456_v3 = vld [vmem:[%s2627_s7 + $0x50] sm:$0xff] }
 0x212   : > { %v1479_v17 = vadd.f32 %v1447_v20, %v1415_v25  ;;  %2046 = vrcp.f32 %v988_v57  ;;  %v2650_v1 = vpop.f32.mrf.mxu3  ;;  %v1323_v20 = vadd.f32 %v2603_v39, %v2601_v47 }
 0x213   : > { %v2039_v4 = vpop.eup %2038  ;;  %1514 = vst.msk [vmem:[%s2634_s10 + $0x18] sm:$0xff] %vm1510_vm2, %v1481_v62 }
 0x214   : > { %v2041_v33 = vpop.eup %2040  ;;  %1512 = vst.msk [vmem:[%s2634_s10 + $0x8] sm:$0xff] %vm1510_vm2, %v1479_v17  ;;  %v1106_v49 = vpack.c.bf16 %v2039_v4, %v2031_v32 }
 0x215   : > { %v1107_v26 = vpack.c.bf16 %v2041_v33, %v2033_v13  ;;  %v1073_v50 = vadd.f32 %v2041_v33, %v2039_v4  ;;  %v1451_v13 = vld [vmem:[%s2627_s7 + $0x28] sm:$0xff] }
 0x216   : > { %v2043_v18 = vpop.eup %2042  ;;  %1287 = vmatmul.bf16.gmra.mxu2 %v1106_v49 }
 0x217   : > { %v2045_v16 = vpop.eup %2044  ;;  %v1420_v23 = vmul.f32 %v2043_v18, %v1318_v7  ;;  %1376 = vmatmul.bf16.gmra.mxu3 %v1107_v26  ;;  %1074 = vadd.xlane.f32.xlu0 %v1073_v50  ;;  %v1009_v10 = vpop.xlane.xlu2 %1008  ;;  %v1335_v26 = vadd.f32 %v2650_v1, %v2648_v48  ;;  %v1461_v50 = vld [vmem:[%s2627_s7 + $0x78] sm:$0xff] }
 0x218   : > { %v1003_v43 = vpop.xlane.xlu0 %1002  ;;  %v2047_v22 = vpop.eup %2046  ;;  %v1418_v6 = vmul.f32 %v2045_v16, %v2581_v9  ;;  %2048 = vrcp.f32 %v1009_v10  ;;  %v1325_v9 = vadd.f32 %v2609_v60, %v2607_v59 }
 0x219   : > { %v997_v28 = vpop.xlane.xlu1 %996  ;;  %v1484_v55 = vadd.f32 %v1452_v30, %v1420_v23  ;;  %v1416_v12 = vmul.f32 %v2047_v22, %v2569_v56  ;;  %2050 = vrcp.f32 %v1003_v43  ;;  %v2663_v29 = vpop.f32.mrf.mxu2  ;;  %v1330_v30 = vadd.f32 %v2622_v53, %v2620_v21  ;;  %v1459_v23 = vld [vmem:[%s2627_s7 + $0x68] sm:$0xff]  ;;  %v1457_v22 = vld [vmem:[%s2627_s7 + $0x58] sm:$0xff] }
 0x21a   : > { %v1482_v46 = vadd.f32 %v1450_v54, %v1418_v6  ;;  %2052 = vrcp.f32 %v997_v28  ;;  %v2665_v2 = vpop.f32.mrf.mxu3 }
 0x21b   : > { %1517 = vst.msk [vmem:[%s2634_s10 + $0x30] sm:$0xff] %vm1510_vm2, %v1484_v55  ;;  %v1480_v0 = vadd.f32 %v1448_v11, %v1416_v12 }
 0x21c   : > { %1515 = vst.msk [vmem:[%s2634_s10 + $0x20] sm:$0xff] %vm1510_vm2, %v1482_v46 }
 0x21d   : > { %1513 = vst.msk [vmem:[%s2634_s10 + $0x10] sm:$0xff] %vm1510_vm2, %v1480_v0  ;;  %v1338_v0 = vadd.f32 %v2665_v2, %v2663_v29  ;;  %v1464_v29 = vld [vmem:[%s2627_s7 + $0x90] sm:$0xff] }
 0x21e   : > { %v2049_v56 = vpop.eup %2048 }
 0x21f   : > { %v2051_v24 = vpop.eup %2050  ;;  %v1423_v34 = vmul.f32 %v2049_v56, %v1325_v9  ;;  %v1018_v41 = vpop.xlane.xlu2 %1017  ;;  %v1462_v9 = vld [vmem:[%s2627_s7 + $0x80] sm:$0xff] }
 0x220   : > { %v1012_v44 = vpop.xlane.xlu0 %1011  ;;  %v2053_v31 = vpop.eup %2052  ;;  %v1421_v32 = vmul.f32 %v2051_v24, %v1320_v63  ;;  %2054 = vrcp.f32 %v1018_v41 }
 0x221   : > { %v1006_v59 = vpop.xlane.xlu1 %1005  ;;  %v1487_v60 = vadd.f32 %v1455_v8, %v1423_v34  ;;  %v1419_v58 = vmul.f32 %v2053_v31, %v2585_v36  ;;  %2056 = vrcp.f32 %v1012_v44  ;;  %v1250_v45 = vpop.f32.mrf.mxu2  ;;  %v1328_v36 = vadd.f32 %v2615_v5, %v2613_v35  ;;  %v1460_v8 = vld [vmem:[%s2627_s7 + $0x70] sm:$0xff] }
 0x222   : > { %v1485_v38 = vadd.f32 %v1453_v40, %v1421_v32  ;;  %2058 = vrcp.f32 %v1006_v59  ;;  %v1339_v15 = vpop.f32.mrf.mxu3 }
 0x223   : > { %1520 = vst.msk [vmem:[%s2634_s10 + $0x48] sm:$0xff] %vm1510_vm2, %v1487_v60  ;;  %v1483_v52 = vadd.f32 %v1451_v13, %v1419_v58  ;;  %v1340_v49 = vadd.f32 %v1339_v15, %v1250_v45  ;;  %v1463_v45 = vld [vmem:[%s2627_s7 + $0x88] sm:$0xff] }
 0x224   : > { %1518 = vst.msk [vmem:[%s2634_s10 + $0x38] sm:$0xff] %vm1510_vm2, %v1485_v38 }
 0x225   : > { %1516 = vst.msk [vmem:[%s2634_s10 + $0x28] sm:$0xff] %vm1510_vm2, %v1483_v52 }
 0x226   : > { %v2055_v61 = vpop.eup %2054 }
 0x227   : > { %v2057_v37 = vpop.eup %2056  ;;  %v1426_v27 = vmul.f32 %v2055_v61, %v1333_v51  ;;  %v1027_v25 = vpop.xlane.xlu2 %1026 }
 0x228   : > { %v1021_v57 = vpop.xlane.xlu0 %1020  ;;  %v2059_v62 = vpop.eup %2058  ;;  %v1424_v14 = vmul.f32 %v2057_v37, %v1328_v36  ;;  %2060 = vrcp.f32 %v1027_v25 }
 0x229   : > { %v1015_v17 = vpop.xlane.xlu1 %1014  ;;  %v1490_v4 = vadd.f32 %v1458_v42, %v1426_v27  ;;  %v1422_v35 = vmul.f32 %v2059_v62, %v1323_v20  ;;  %2062 = vrcp.f32 %v1021_v57  ;;  %v1253_v5 = vpop.f32.mrf.mxu2  ;;  %v1465_v20 = vld [vmem:[%s2627_s7 + $0x98] sm:$0xff] }
 0x22a   : > { %v1488_v33 = vadd.f32 %v1456_v3, %v1424_v14  ;;  %2064 = vrcp.f32 %v1015_v17  ;;  %v1342_v47 = vpop.f32.mrf.mxu3  ;;  %v1466_v17 = vld [vmem:[%s2627_s7 + $0xa0] sm:$0xff] }
 0x22b   : > { %1523 = vst.msk [vmem:[%s2634_s10 + $0x60] sm:$0xff] %vm1510_vm2, %v1490_v4  ;;  %v1486_v39 = vadd.f32 %v1454_v19, %v1422_v35  ;;  %v1343_v12 = vadd.f32 %v1342_v47, %v1253_v5 }
 0x22c   : > { %1521 = vst.msk [vmem:[%s2634_s10 + $0x50] sm:$0xff] %vm1510_vm2, %v1488_v33 }
 0x22d   : > { %1519 = vst.msk [vmem:[%s2634_s10 + $0x40] sm:$0xff] %vm1510_vm2, %v1486_v39 }
 0x22e   : > { %v2061_v7 = vpop.eup %2060 }
 0x22f   : > { %v2063_v18 = vpop.eup %2062  ;;  %v1429_v16 = vmul.f32 %v2061_v7, %v1340_v49  ;;  %v1036_v53 = vpop.xlane.xlu2 %1035  ;;  %v1467_v7 = vld [vmem:[%s2627_s7 + $0xa8] sm:$0xff] }
 0x230   : > { %v1030_v54 = vpop.xlane.xlu0 %1029  ;;  %v2065_v10 = vpop.eup %2064  ;;  %v1427_v43 = vmul.f32 %v2063_v18, %v1335_v26 }
 0x231   : > { %v1024_v6 = vpop.xlane.xlu1 %1023  ;;  %v1493_v11 = vadd.f32 %v1461_v50, %v1429_v16  ;;  %v1425_v28 = vmul.f32 %v2065_v10, %v1330_v30  ;;  %2066 = vrcp.f32 %v1030_v54  ;;  %v1255_v48 = vpop.f32.mrf.mxu2  ;;  %v1468_v10 = vld [vmem:[%s2627_s7 + $0xb0] sm:$0xff] }
 0x232   : > { %v1491_v1 = vadd.f32 %v1459_v23, %v1427_v43  ;;  %2068 = vrcp.f32 %v1024_v6  ;;  %v1344_v55 = vpop.f32.mrf.mxu3 }
 0x233   : > { %1526 = vst.msk [vmem:[%s2634_s10 + $0x78] sm:$0xff] %vm1510_vm2, %v1493_v11  ;;  %v1489_v21 = vadd.f32 %v1457_v22, %v1425_v28  ;;  %2070 = vrcp.f32 %v1036_v53  ;;  %v1345_v60 = vadd.f32 %v1344_v55, %v1255_v48  ;;  %v1469_v55 = vld [vmem:[%s2627_s7 + $0xb8] sm:$0xff] }
 0x234   : > { %1524 = vst.msk [vmem:[%s2634_s10 + $0x68] sm:$0xff] %vm1510_vm2, %v1491_v1 }
 0x235   : > { %1522 = vst.msk [vmem:[%s2634_s10 + $0x58] sm:$0xff] %vm1510_vm2, %v1489_v21 }
 0x237   : > { %v2067_v46 = vpop.eup %2066 }
 0x238   : > { %v2069_v56 = vpop.eup %2068  ;;  %v1430_v63 = vmul.f32 %v2067_v46, %v1343_v12  ;;  %v1039_v32 = vpop.xlane.xlu0 %1038 }
 0x239   : > { %v1033_v24 = vpop.xlane.xlu1 %1032  ;;  %v1428_v34 = vmul.f32 %v2069_v56, %v1338_v0  ;;  %v1258_v40 = vpop.f32.mrf.mxu2 }
 0x23a   : > { %2072 = vrcp.f32 %v1033_v24  ;;  %v1494_v41 = vadd.f32 %v1462_v9, %v1430_v63  ;;  %v1347_v44 = vpop.f32.mrf.mxu3  ;;  %v2071_v59 = vpop.eup %2070  ;;  %v1470_v63 = vld [vmem:[%s2627_s7 + $0xc0] sm:$0xff] }
 0x23b   : > { %v1492_v31 = vadd.f32 %v1460_v8, %v1428_v34  ;;  %v1348_v13 = vadd.f32 %v1347_v44, %v1258_v40  ;;  %2074 = vrcp.f32 %v1039_v32  ;;  %v1045_v62 = vpop.xlane.xlu2 %1044  ;;  %v1471_v32 = vld [vmem:[%s2627_s7 + $0xc8] sm:$0xff] }
 0x23c   : > { %1527 = vst.msk [vmem:[%s2634_s10 + $0x80] sm:$0xff] %vm1510_vm2, %v1494_v41 }
 0x23d   : > { %1525 = vst.msk [vmem:[%s2634_s10 + $0x70] sm:$0xff] %vm1510_vm2, %v1492_v31  ;;  %v1432_v2 = vmul.f32 %v2071_v59, %v1348_v13 }
 0x23f   : > { %v1496_v38 = vadd.f32 %v1464_v29, %v1432_v2 }
 0x240   : > { %v2073_v58 = vpop.eup %2072 }
 0x241   : > { %v1431_v15 = vmul.f32 %v2073_v58, %v1345_v60  ;;  %1529 = vst.msk [vmem:[%s2634_s10 + $0x90] sm:$0xff] %vm1510_vm2, %v1496_v38  ;;  %v1260_v52 = vpop.f32.mrf.mxu2  ;;  %v1042_v36 = vpop.xlane.xlu1 %1041  ;;  %v1472_v38 = vld [vmem:[%s2627_s7 + $0xd0] sm:$0xff] }
 0x242   : > { %v1349_v61 = vpop.f32.mrf.mxu3  ;;  %v2075_v37 = vpop.eup %2074  ;;  %2076 = vrcp.f32 %v1042_v36 }
 0x243   : > { %v1495_v51 = vadd.f32 %v1463_v45, %v1431_v15  ;;  %v1350_v42 = vadd.f32 %v1349_v61, %v1260_v52  ;;  %2078 = vrcp.f32 %v1045_v62  ;;  %v1048_v47 = vpop.xlane.xlu0 %1047 }
 0x244   : > { %2080 = vrcp.f32 %v1048_v47 }
 0x245   : > { %1528 = vst.msk [vmem:[%s2634_s10 + $0x88] sm:$0xff] %vm1510_vm2, %v1495_v51  ;;  %v1433_v27 = vmul.f32 %v2075_v37, %v1350_v42 }
 0x247   : > { %v1497_v3 = vadd.f32 %v1465_v20, %v1433_v27  ;;  %v1473_v20 = vld [vmem:[%s2627_s7 + $0xd8] sm:$0xff] }
 0x248   : > { %v2077_v19 = vpop.eup %2076 }
 0x249   : > { %1530 = vst.msk [vmem:[%s2634_s10 + $0x98] sm:$0xff] %vm1510_vm2, %v1497_v3  ;;  %v1263_v25 = vpop.f32.mrf.mxu2  ;;  %v2079_v49 = vpop.eup %2078 }
 0x24a   : > { %v1352_v57 = vpop.f32.mrf.mxu3  ;;  %v1051_v16 = vpop.xlane.xlu1 %1050 }
 0x24b   : > { %v1353_v14 = vadd.f32 %v1352_v57, %v1263_v25  ;;  %v2081_v54 = vpop.eup %2080  ;;  %2082 = vrcp.f32 %v1051_v16 }
 0x24d   : > { %v1434_v4 = vmul.f32 %v2077_v19, %v1353_v14 }
 0x24f   : > { %v1498_v35 = vadd.f32 %v1466_v17, %v1434_v4  ;;  %v1474_v17 = vld [vmem:[%s2627_s7 + $0xe0] sm:$0xff] }
 0x251   : > { %1531 = vst.msk [vmem:[%s2634_s10 + $0xa0] sm:$0xff] %vm1510_vm2, %v1498_v35  ;;  %v1265_v5 = vpop.f32.mrf.mxu2  ;;  %v1054_v28 = vpop.xlane.xlu2 %1053 }
 0x252   : > { %v1354_v33 = vpop.f32.mrf.mxu3  ;;  %v2083_v1 = vpop.eup %2082  ;;  %2084 = vrcp.f32 %v1054_v28 }
 0x253   : > { %v1355_v39 = vadd.f32 %v1354_v33, %v1265_v5 }
 0x255   : > { %v1435_v26 = vmul.f32 %v2079_v49, %v1355_v39 }
 0x257   : > { %v1499_v50 = vadd.f32 %v1467_v7, %v1435_v26  ;;  %v1475_v7 = vld [vmem:[%s2627_s7 + $0xe8] sm:$0xff] }
 0x258   : > { %v2085_v56 = vpop.eup %2084 }
 0x259   : > { %1532 = vst.msk [vmem:[%s2634_s10 + $0xa8] sm:$0xff] %vm1510_vm2, %v1499_v50  ;;  %v1268_v18 = vpop.f32.mrf.mxu2  ;;  %v1057_v0 = vpop.xlane.xlu0 %1056 }
 0x25a   : > { %v1357_v30 = vpop.f32.mrf.mxu3  ;;  %2086 = vrcp.f32 %v1057_v0 }
 0x25b   : > { %v1358_v23 = vadd.f32 %v1357_v30, %v1268_v18 }
 0x25d   : > { %v1436_v43 = vmul.f32 %v2081_v54, %v1358_v23 }
 0x25f   : > { %v1500_v22 = vadd.f32 %v1468_v10, %v1436_v43  ;;  %v1476_v10 = vld [vmem:[%s2627_s7 + $0xf0] sm:$0xff] }
 0x260   : > { %v2087_v31 = vpop.eup %2086 }
 0x261   : > { %1533 = vst.msk [vmem:[%s2634_s10 + $0xb0] sm:$0xff] %vm1510_vm2, %v1500_v22  ;;  %v1270_v6 = vpop.f32.mrf.mxu2  ;;  %v1060_v41 = vpop.xlane.xlu1 %1059 }
 0x262   : > { %v1359_v11 = vpop.f32.mrf.mxu3  ;;  %2088 = vrcp.f32 %v1060_v41 }
 0x263   : > { %v1360_v48 = vadd.f32 %v1359_v11, %v1270_v6 }
 0x265   : > { %v1437_v21 = vmul.f32 %v2083_v1, %v1360_v48  ;;  %v1477_v1 = vld [vmem:[%s2627_s7 + $0xf8] sm:$0xff] }
 0x267   : > { %v1501_v53 = vadd.f32 %v1469_v55, %v1437_v21 }
 0x268   : > { %v2089_v45 = vpop.eup %2088 }
 0x269   : > { %1534 = vst.msk [vmem:[%s2634_s10 + $0xb8] sm:$0xff] %vm1510_vm2, %v1501_v53  ;;  %v1273_v12 = vpop.f32.mrf.mxu2  ;;  %v1063_v60 = vpop.xlane.xlu2 %1062 }
 0x26a   : > { %v1362_v46 = vpop.f32.mrf.mxu3  ;;  %2090 = vrcp.f32 %v1063_v60 }
 0x26b   : > { %v1363_v9 = vadd.f32 %v1362_v46, %v1273_v12 }
 0x26d   : > { %v1438_v8 = vmul.f32 %v2085_v56, %v1363_v9 }
 0x26f   : > { %v1502_v24 = vadd.f32 %v1470_v63, %v1438_v8 }
 0x270   : > { %v2091_v37 = vpop.eup %2090 }
 0x271   : > { %1535 = vst.msk [vmem:[%s2634_s10 + $0xc0] sm:$0xff] %vm1510_vm2, %v1502_v24  ;;  %v1275_v34 = vpop.f32.mrf.mxu2  ;;  %v1066_v36 = vpop.xlane.xlu0 %1065 }
 0x272   : > { %v1364_v40 = vpop.f32.mrf.mxu3  ;;  %2092 = vrcp.f32 %v1066_v36 }
 0x273   : > { %v1365_v44 = vadd.f32 %v1364_v40, %v1275_v34 }
 0x275   : > { %v1439_v13 = vmul.f32 %v2087_v31, %v1365_v44 }
 0x277   : > { %v1503_v59 = vadd.f32 %v1471_v32, %v1439_v13 }
 0x278   : > { %v2093_v19 = vpop.eup %2092 }
 0x279   : > { %1536 = vst.msk [vmem:[%s2634_s10 + $0xc8] sm:$0xff] %vm1510_vm2, %v1503_v59  ;;  %v1278_v29 = vpop.f32.mrf.mxu2  ;;  %v1069_v62 = vpop.xlane.xlu1 %1068 }
 0x27a   : > { %v1367_v2 = vpop.f32.mrf.mxu3  ;;  %2094 = vrcp.f32 %v1069_v62 }
 0x27b   : > { %v1368_v58 = vadd.f32 %v1367_v2, %v1278_v29 }
 0x27d   : > { %v1440_v15 = vmul.f32 %v2089_v45, %v1368_v58 }
 0x27f   : > { %v1504_v52 = vadd.f32 %v1472_v38, %v1440_v15 }
 0x280   : > { %v2095_v49 = vpop.eup %2094 }
 0x281   : > { %1537 = vst.msk [vmem:[%s2634_s10 + $0xd0] sm:$0xff] %vm1510_vm2, %v1504_v52  ;;  %v1280_v51 = vpop.f32.mrf.mxu2  ;;  %v1072_v47 = vpop.xlane.xlu2 %1071 }
 0x282   : > { %v1369_v61 = vpop.f32.mrf.mxu3  ;;  %2096 = vrcp.f32 %v1072_v47 }
 0x283   : > { %v1370_v42 = vadd.f32 %v1369_v61, %v1280_v51 }
 0x285   : > { %v1441_v27 = vmul.f32 %v2091_v37, %v1370_v42 }
 0x287   : > { %v1505_v3 = vadd.f32 %v1473_v20, %v1441_v27 }
 0x288   : > { %v2097_v54 = vpop.eup %2096 }
 0x289   : > { %1538 = vst.msk [vmem:[%s2634_s10 + $0xd8] sm:$0xff] %vm1510_vm2, %v1505_v3  ;;  %v1283_v25 = vpop.f32.mrf.mxu2 }
 0x28a   : > { %v1372_v57 = vpop.f32.mrf.mxu3  ;;  %v1075_v16 = vpop.xlane.xlu0 %1074 }
 0x28b   : > { %v1373_v14 = vadd.f32 %v1372_v57, %v1283_v25  ;;  %2098 = vrcp.f32 %v1075_v16 }
 0x28d   : > { %v1442_v4 = vmul.f32 %v2093_v19, %v1373_v14 }
 0x28f   : > { %v1506_v35 = vadd.f32 %v1474_v17, %v1442_v4 }
 0x291   : > { %1539 = vst.msk [vmem:[%s2634_s10 + $0xe0] sm:$0xff] %vm1510_vm2, %v1506_v35  ;;  %v1285_v5 = vpop.f32.mrf.mxu2  ;;  %v2099_v48 = vpop.eup %2098 }
 0x292   : > { %v1374_v33 = vpop.f32.mrf.mxu3 }
 0x293   : > { %v1375_v39 = vadd.f32 %v1374_v33, %v1285_v5 }
 0x295   : > { %v1443_v26 = vmul.f32 %v2095_v49, %v1375_v39 }
 0x297   : > { %v1507_v50 = vadd.f32 %v1475_v7, %v1443_v26 }
 0x299   : > { %1540 = vst.msk [vmem:[%s2634_s10 + $0xe8] sm:$0xff] %vm1510_vm2, %v1507_v50  ;;  %v1288_v18 = vpop.f32.mrf.mxu2 }
 0x29a   : > { %v1377_v30 = vpop.f32.mrf.mxu3 }
 0x29b   : > { %v1378_v23 = vadd.f32 %v1377_v30, %v1288_v18 }
 0x29d   : > { %v1444_v43 = vmul.f32 %v2097_v54, %v1378_v23 }
 0x29f   : > { %v1508_v22 = vadd.f32 %v1476_v10, %v1444_v43 }
 0x2a1   : > { %1541 = vst.msk [vmem:[%s2634_s10 + $0xf0] sm:$0xff] %vm1510_vm2, %v1508_v22  ;;  %v1290_v6 = vpop.f32.mrf.mxu2 }
 0x2a2   : > { %v1379_v11 = vpop.f32.mrf.mxu3 }
 0x2a3   : > { %v1380_v28 = vadd.f32 %v1379_v11, %v1290_v6 }
 0x2a5   : > { %v1445_v55 = vmul.f32 %v2099_v48, %v1380_v28 }
 0x2a7   : > { %v1509_v21 = vadd.f32 %v1477_v1, %v1445_v55 }
 0x2a9   : > { %1542 = vst.msk [vmem:[%s2634_s10 + $0xf8] sm:$0xff] %vm1510_vm2, %v1509_v21 }
 0x2aa PF: > { %s14_s17 = sadd.s32 1, %s2122_s17   ;;  %s2782_s15 = smov %s2118_s16 }
 0x2ab   : > { %p11_p5 = scmp.ge.s32.totalorder %s14_s17, 4   ;;  %s2783_s16 = smov %s2785_s18 }
 0x2ad   :  { %13 = sbr.rel (!%p11_p5) target bundleno = 2 (0x2), region = 75 }

</bundles_post_ra>
